<compile_context>
chip_gen: v6e
topology: v6e:2x2x1
jax: 0.10.0
libtpu: 0.0.40
codegen_flags: <defaults>
</compile_context>

<pallas_src>
import jax
import jax.numpy as jnp
from jax.experimental import pallas as pl
from jax.experimental.pallas import tpu as pltpu


def _leaky_relu(x, slope=0.2):
    return jnp.where(x > 0, x, slope * x)


def discriminator_kernel(x_ref,
                         w1_ref, b1_ref,
                         w2_ref, b2_ref,
                         w3_ref, b3_ref,
                         w4_ref, b4_ref,
                         o_ref):
    """One batch tile of the fused MLP.

    x_ref: (TILE_B, 1024) in its native dtype (f32 here); w1..w3: bf16 (in, out);
    b1..b3: (1, out) f32; w4_ref: (1, 128) f32 row; b4_ref: (1, 1) f32.
    MXU matmuls accumulate in f32; elementwise math stays f32 on the VPU.
    """
    # Cast x to bf16 in-kernel (VPU has >4x slack here) instead of paying a
    # separate un-fused HBM cast pass in the wrapper.
    x = x_ref[...].astype(jnp.bfloat16)

    h = jnp.dot(x, w1_ref[...], preferred_element_type=jnp.float32) + b1_ref[...]
    h = _leaky_relu(h)

    h = jnp.dot(h.astype(jnp.bfloat16), w2_ref[...],
                preferred_element_type=jnp.float32) + b2_ref[...]
    h = _leaky_relu(h)

    h = jnp.dot(h.astype(jnp.bfloat16), w3_ref[...],
                preferred_element_type=jnp.float32) + b3_ref[...]
    h = _leaky_relu(h)

    # Final 128->1 layer on the VPU: an N=1 matmul would use 1/256 of the MXU
    # columns and lower to lane-sparse masked stores.
    o = jnp.sum(h * w4_ref[...], axis=-1, keepdims=True) + b4_ref[...]
    o_ref[...] = o.astype(o_ref.dtype)


def _round_up(n, m):
    return (n + m - 1) // m * m


def _vmem_limit_bytes():
    # Don't request all of physical VMEM (v7x has only 64 MiB per TC).
    try:
        cap = pltpu.get_tpu_info().vmem_capacity_bytes
    except Exception:
        cap = 64 << 20
    return int(min(48 << 20, cap // 2))


def _choose_tiling(B, *, max_tile=1024, min_tile=256):
    """Pick (tile_b, pad_b).

    tile_b is a multiple of 16 (bf16 sublane packing safety); pad_b is a
    multiple of tile_b. Preference order: large tiles (>= min_tile rows to
    amortize the ~0.35us/grid-step overhead), minimal zero-row padding, an
    even tile count (balances v7x's two TensorCores), then the largest tile.
    """
    padded = _round_up(max(B, 16), 16)
    if padded <= min_tile:
        # Tiny batch: one tile covering the whole (padded) batch.
        return padded, padded

    best = None
    for t in range(16, max_tile + 1, 16):
        pad_b = _round_up(padded, t)
        n = pad_b // t
        score = (
            min(t, min_tile),      # amortize per-step overhead (capped)
            -(pad_b - B),          # minimize wasted (zero) rows
            (n % 2 == 0),          # even split across v7x's 2 TensorCores
            t,                     # then prefer the largest tile
        )
        if best is None or score > best[0]:
            best = (score, t, pad_b)
    return best[1], best[2]


def prepare_params(params):
    """One-time conversion to the kernel-ready layout. Call ONCE, outside the
    hot path (e.g. when weights are created/updated), not per forward call:
    bf16 (in, out) matmul weights, f32 (1, out) biases, f32 (1, 128)/(1, 1)
    final layer for the VPU reduction."""
    return {
        "w1": params["w1"].astype(jnp.bfloat16),
        "w2": params["w2"].astype(jnp.bfloat16),
        "w3": params["w3"].astype(jnp.bfloat16),
        "w4": params["w4"].reshape(1, 128).astype(jnp.float32),
        "b1": params["b1"].astype(jnp.float32),
        "b2": params["b2"].astype(jnp.float32),
        "b3": params["b3"].astype(jnp.float32),
        "b4": params["b4"].reshape(1, 1).astype(jnp.float32),
    }


def discriminator_forward(x, kparams, *, max_tile=1024):
    """x: (B, 1024) float32. kparams: output of prepare_params().
    Returns (B, 1) float32."""
    B, D = x.shape
    assert D == 1024, D

    tile_b, pad_b = _choose_tiling(B, max_tile=max_tile)
    if pad_b != B:
        x = jnp.pad(x, ((0, pad_b - B), (0, 0)))
    n_tiles = pad_b // tile_b

    def const(shape):
        # Constant block index -> fetched once, stays VMEM-resident.
        return pl.BlockSpec(shape, lambda i: (0, 0))

    out = pl.pallas_call(
        discriminator_kernel,
        out_shape=jax.ShapeDtypeStruct((pad_b, 1), jnp.float32),
        grid=(n_tiles,),
        in_specs=[
            pl.BlockSpec((tile_b, 1024), lambda i: (i, 0)),   # x: streamed per tile
            const((1024, 512)), const((1, 512)),              # layer 1 (resident)
            const((512, 512)),  const((1, 512)),              # layer 2
            const((512, 128)),  const((1, 128)),              # layer 3
            const((1, 128)),    const((1, 1)),                # layer 4 (VPU)
        ],
        out_specs=pl.BlockSpec((tile_b, 1), lambda i: (i, 0)),
        compiler_params=pltpu.CompilerParams(
            dimension_semantics=("parallel",),   # shard batch tiles across TCs (v7x)
            vmem_limit_bytes=_vmem_limit_bytes(),
        ),
    )(x,
      kparams["w1"], kparams["b1"],
      kparams["w2"], kparams["b2"],
      kparams["w3"], kparams["b3"],
      kparams["w4"], kparams["b4"])

    return out[:B]


def init_params(key):
    """Deterministic init mirroring nn.Linear default (uniform +-1/sqrt(fan_in)).
    Weights are (in_features, out_features); biases are (1, out_features)."""
    dims = [(1024, 512), (512, 512), (512, 128), (128, 1)]
    params = {}
    for i, (fi, fo) in enumerate(dims, start=1):
        key, kw, kb = jax.random.split(key, 3)
        bound = 1.0 / jnp.sqrt(fi)
        params[f"w{i}"] = jax.random.uniform(
            kw, (fi, fo), jnp.float32, minval=-bound, maxval=bound)
        params[f"b{i}"] = jax.random.uniform(
            kb, (1, fo), jnp.float32, minval=-bound, maxval=bound)
    return params


def reference_forward(x, params):
    """Pure-JAX reference mirroring the kernel's bf16-operand / f32-accum path.
    (bf16 operands deviate ~1e-2 relative from a pure-f32 PyTorch reference.)"""
    h = jnp.dot(x.astype(jnp.bfloat16), params["w1"].astype(jnp.bfloat16),
                preferred_element_type=jnp.float32) + params["b1"]
    h = jnp.where(h > 0, h, 0.2 * h)
    h = jnp.dot(h.astype(jnp.bfloat16), params["w2"].astype(jnp.bfloat16),
                preferred_element_type=jnp.float32) + params["b2"]
    h = jnp.where(h > 0, h, 0.2 * h)
    h = jnp.dot(h.astype(jnp.bfloat16), params["w3"].astype(jnp.bfloat16),
                preferred_element_type=jnp.float32) + params["b3"]
    h = jnp.where(h > 0, h, 0.2 * h)
    return jnp.sum(h * params["w4"].reshape(1, 128), axis=-1,
                   keepdims=True) + params["b4"].reshape(1, 1)


if __name__ == "__main__":
    key = jax.random.PRNGKey(0)
    key, kx = jax.random.split(key)

    params = init_params(key)
    kparams = prepare_params(params)   # one-time weight prep, outside hot path

    # Small-shape check (single tile, batch padded 8 -> 16).
    B = 8
    x = jax.random.normal(kx, (B, 1024), dtype=jnp.float32)
    out = jax.block_until_ready(discriminator_forward(x, kparams))
    ref = reference_forward(x, params)
    assert out.shape == (B, 1), out.shape
    assert jnp.allclose(out, ref, atol=1e-2, rtol=1e-2), "mismatch vs reference (small)"

    # Uneven-batch / multi-tile check (exercises adaptive tiling + parallel grid:
    # B=540 -> pad 544, two tiles of 272 rows).
    key, kx2 = jax.random.split(key)
    B2 = 540
    x2 = jax.random.normal(kx2, (B2, 1024), dtype=jnp.float32)
    out2 = jax.block_until_ready(discriminator_forward(x2, kparams))
    ref2 = reference_forward(x2, params)
    assert out2.shape == (B2, 1), out2.shape
    assert jnp.allclose(out2, ref2, atol=1e-2, rtol=1e-2), "mismatch vs reference (multi-tile)"

    print("KERNEL_OK")
</pallas_src>

<mosaic_0001>
module attributes {stable_mosaic.version = 11 : i64} {
  func.func @discriminator_kernel(%arg0: i32, %arg1: memref<16x1024xf32, #tpu.memory_space<vmem>>, %arg2: memref<1024x512xbf16, #tpu.memory_space<vmem>>, %arg3: memref<1x512xf32, #tpu.memory_space<vmem>>, %arg4: memref<512x512xbf16, #tpu.memory_space<vmem>>, %arg5: memref<1x512xf32, #tpu.memory_space<vmem>>, %arg6: memref<512x128xbf16, #tpu.memory_space<vmem>>, %arg7: memref<1x128xf32, #tpu.memory_space<vmem>>, %arg8: memref<1x128xf32, #tpu.memory_space<vmem>>, %arg9: memref<1x1xf32, #tpu.memory_space<vmem>>, %arg10: memref<16x1xf32, #tpu.memory_space<vmem>>) attributes {dimension_semantics = [#tpu.dimension_semantics<parallel>], iteration_bounds = array<i64: 1>, scalar_prefetch = 0 : i64, scratch_operands = 0 : i64, tpu.core_type = #tpu.core_type<tc>, window_params = [{transform_indices = @transform_0, window_bounds = array<i64: 16, 1024>}, {pipeline_mode = #tpu.pipeline_mode<synchronous>, transform_indices = @transform_1, window_bounds = array<i64: 1024, 512>}, {pipeline_mode = #tpu.pipeline_mode<synchronous>, transform_indices = @transform_2, window_bounds = array<i64: 1, 512>}, {pipeline_mode = #tpu.pipeline_mode<synchronous>, transform_indices = @transform_3, window_bounds = array<i64: 512, 512>}, {pipeline_mode = #tpu.pipeline_mode<synchronous>, transform_indices = @transform_4, window_bounds = array<i64: 1, 512>}, {pipeline_mode = #tpu.pipeline_mode<synchronous>, transform_indices = @transform_5, window_bounds = array<i64: 512, 128>}, {pipeline_mode = #tpu.pipeline_mode<synchronous>, transform_indices = @transform_6, window_bounds = array<i64: 1, 128>}, {pipeline_mode = #tpu.pipeline_mode<synchronous>, transform_indices = @transform_7, window_bounds = array<i64: 1, 128>}, {pipeline_mode = #tpu.pipeline_mode<synchronous>, transform_indices = @transform_8, window_bounds = array<i64: 1, 1>}, {transform_indices = @transform_9, window_bounds = array<i64: 16, 1>}]} {
    %c0 = arith.constant 0 : index
    %c0_0 = arith.constant 0 : index
    %0 = vector.load %arg1[%c0, %c0_0] : memref<16x1024xf32, #tpu.memory_space<vmem>>, vector<16x1024xf32>
    %1 = arith.truncf %0 : vector<16x1024xf32> to vector<16x1024xbf16>
    %c0_1 = arith.constant 0 : index
    %c0_2 = arith.constant 0 : index
    %2 = vector.load %arg2[%c0_1, %c0_2] : memref<1024x512xbf16, #tpu.memory_space<vmem>>, vector<1024x512xbf16>
    %cst = arith.constant dense<0.000000e+00> : vector<16x512xf32>
    %3 = tpu.matmul %1, %2, %cst {dimension_numbers = #tpu.dot_dimension_numbers<[1], [0], [0], [1], [0, 0, 1, 1], [], []>} : vector<16x1024xbf16>, vector<1024x512xbf16>, vector<16x512xf32> -> vector<16x512xf32>
    %c0_3 = arith.constant 0 : index
    %c0_4 = arith.constant 0 : index
    %4 = vector.load %arg3[%c0_3, %c0_4] : memref<1x512xf32, #tpu.memory_space<vmem>>, vector<1x512xf32>
    %5 = vector.broadcast %4 : vector<1x512xf32> to vector<16x512xf32>
    %6 = arith.addf %3, %5 : vector<16x512xf32>
    %cst_5 = arith.constant 0.000000e+00 : f32
    %7 = vector.broadcast %cst_5 : f32 to vector<16x512xf32>
    %8 = arith.cmpf ogt, %6, %7 : vector<16x512xf32>
    %cst_6 = arith.constant 2.000000e-01 : f32
    %9 = vector.broadcast %cst_6 : f32 to vector<16x512xf32>
    %10 = arith.mulf %9, %6 : vector<16x512xf32>
    %11 = arith.select %8, %6, %10 : vector<16x512xi1>, vector<16x512xf32>
    %12 = arith.truncf %11 : vector<16x512xf32> to vector<16x512xbf16>
    %c0_7 = arith.constant 0 : index
    %c0_8 = arith.constant 0 : index
    %13 = vector.load %arg4[%c0_7, %c0_8] : memref<512x512xbf16, #tpu.memory_space<vmem>>, vector<512x512xbf16>
    %cst_9 = arith.constant dense<0.000000e+00> : vector<16x512xf32>
    %14 = tpu.matmul %12, %13, %cst_9 {dimension_numbers = #tpu.dot_dimension_numbers<[1], [0], [0], [1], [0, 0, 1, 1], [], []>} : vector<16x512xbf16>, vector<512x512xbf16>, vector<16x512xf32> -> vector<16x512xf32>
    %c0_10 = arith.constant 0 : index
    %c0_11 = arith.constant 0 : index
    %15 = vector.load %arg5[%c0_10, %c0_11] : memref<1x512xf32, #tpu.memory_space<vmem>>, vector<1x512xf32>
    %16 = vector.broadcast %15 : vector<1x512xf32> to vector<16x512xf32>
    %17 = arith.addf %14, %16 : vector<16x512xf32>
    %cst_12 = arith.constant 0.000000e+00 : f32
    %18 = vector.broadcast %cst_12 : f32 to vector<16x512xf32>
    %19 = arith.cmpf ogt, %17, %18 : vector<16x512xf32>
    %cst_13 = arith.constant 2.000000e-01 : f32
    %20 = vector.broadcast %cst_13 : f32 to vector<16x512xf32>
    %21 = arith.mulf %20, %17 : vector<16x512xf32>
    %22 = arith.select %19, %17, %21 : vector<16x512xi1>, vector<16x512xf32>
    %23 = arith.truncf %22 : vector<16x512xf32> to vector<16x512xbf16>
    %c0_14 = arith.constant 0 : index
    %c0_15 = arith.constant 0 : index
    %24 = vector.load %arg6[%c0_14, %c0_15] : memref<512x128xbf16, #tpu.memory_space<vmem>>, vector<512x128xbf16>
    %cst_16 = arith.constant dense<0.000000e+00> : vector<16x128xf32>
    %25 = tpu.matmul %23, %24, %cst_16 {dimension_numbers = #tpu.dot_dimension_numbers<[1], [0], [0], [1], [0, 0, 1, 1], [], []>} : vector<16x512xbf16>, vector<512x128xbf16>, vector<16x128xf32> -> vector<16x128xf32>
    %c0_17 = arith.constant 0 : index
    %c0_18 = arith.constant 0 : index
    %26 = vector.load %arg7[%c0_17, %c0_18] : memref<1x128xf32, #tpu.memory_space<vmem>>, vector<1x128xf32>
    %27 = vector.broadcast %26 : vector<1x128xf32> to vector<16x128xf32>
    %28 = arith.addf %25, %27 : vector<16x128xf32>
    %cst_19 = arith.constant 0.000000e+00 : f32
    %29 = vector.broadcast %cst_19 : f32 to vector<16x128xf32>
    %30 = arith.cmpf ogt, %28, %29 : vector<16x128xf32>
    %cst_20 = arith.constant 2.000000e-01 : f32
    %31 = vector.broadcast %cst_20 : f32 to vector<16x128xf32>
    %32 = arith.mulf %31, %28 : vector<16x128xf32>
    %33 = arith.select %30, %28, %32 : vector<16x128xi1>, vector<16x128xf32>
    %c0_21 = arith.constant 0 : index
    %c0_22 = arith.constant 0 : index
    %34 = vector.load %arg8[%c0_21, %c0_22] : memref<1x128xf32, #tpu.memory_space<vmem>>, vector<1x128xf32>
    %35 = vector.broadcast %34 : vector<1x128xf32> to vector<16x128xf32>
    %36 = arith.mulf %33, %35 : vector<16x128xf32>
    %cst_23 = arith.constant dense<0.000000e+00> : vector<16xf32>
    %37 = vector.multi_reduction <add>, %36, %cst_23 [1] : vector<16x128xf32> to vector<16xf32>
    %38 = vector.shape_cast %37 : vector<16xf32> to vector<16x1xf32>
    %c0_24 = arith.constant 0 : index
    %c0_25 = arith.constant 0 : index
    %39 = vector.load %arg9[%c0_24, %c0_25] : memref<1x1xf32, #tpu.memory_space<vmem>>, vector<1x1xf32>
    %40 = vector.broadcast %39 : vector<1x1xf32> to vector<16x1xf32>
    %41 = arith.addf %38, %40 : vector<16x1xf32>
    %c0_26 = arith.constant 0 : index
    %c0_27 = arith.constant 0 : index
    %42 = vector.load %arg10[%c0_26, %c0_27] : memref<16x1xf32, #tpu.memory_space<vmem>>, vector<16x1xf32>
    tpu.vector_store %arg10[%c0_26, %c0_27], %41 {strides = array<i32>} : memref<16x1xf32, #tpu.memory_space<vmem>>, vector<16x1xf32>,
    return
  }
  func.func @transform_0(%arg0: i32) -> (i32, i32) {
    %c0_i32 = arith.constant 0 : i32
    %c0_i32_0 = arith.constant 0 : i32
    return %arg0, %c0_i32 : i32, i32
  }
  func.func @transform_1(%arg0: i32) -> (i32, i32) {
    %c0_i32 = arith.constant 0 : i32
    %c0_i32_0 = arith.constant 0 : i32
    %c0_i32_1 = arith.constant 0 : i32
    return %c0_i32, %c0_i32_0 : i32, i32
  }
  func.func @transform_2(%arg0: i32) -> (i32, i32) {
    %c0_i32 = arith.constant 0 : i32
    %c0_i32_0 = arith.constant 0 : i32
    %c0_i32_1 = arith.constant 0 : i32
    return %c0_i32, %c0_i32_0 : i32, i32
  }
  func.func @transform_3(%arg0: i32) -> (i32, i32) {
    %c0_i32 = arith.constant 0 : i32
    %c0_i32_0 = arith.constant 0 : i32
    %c0_i32_1 = arith.constant 0 : i32
    return %c0_i32, %c0_i32_0 : i32, i32
  }
  func.func @transform_4(%arg0: i32) -> (i32, i32) {
    %c0_i32 = arith.constant 0 : i32
    %c0_i32_0 = arith.constant 0 : i32
    %c0_i32_1 = arith.constant 0 : i32
    return %c0_i32, %c0_i32_0 : i32, i32
  }
  func.func @transform_5(%arg0: i32) -> (i32, i32) {
    %c0_i32 = arith.constant 0 : i32
    %c0_i32_0 = arith.constant 0 : i32
    %c0_i32_1 = arith.constant 0 : i32
    return %c0_i32, %c0_i32_0 : i32, i32
  }
  func.func @transform_6(%arg0: i32) -> (i32, i32) {
    %c0_i32 = arith.constant 0 : i32
    %c0_i32_0 = arith.constant 0 : i32
    %c0_i32_1 = arith.constant 0 : i32
    return %c0_i32, %c0_i32_0 : i32, i32
  }
  func.func @transform_7(%arg0: i32) -> (i32, i32) {
    %c0_i32 = arith.constant 0 : i32
    %c0_i32_0 = arith.constant 0 : i32
    %c0_i32_1 = arith.constant 0 : i32
    return %c0_i32, %c0_i32_0 : i32, i32
  }
  func.func @transform_8(%arg0: i32) -> (i32, i32) {
    %c0_i32 = arith.constant 0 : i32
    %c0_i32_0 = arith.constant 0 : i32
    %c0_i32_1 = arith.constant 0 : i32
    return %c0_i32, %c0_i32_0 : i32, i32
  }
  func.func @transform_9(%arg0: i32) -> (i32, i32) {
    %c0_i32 = arith.constant 0 : i32
    %c0_i32_0 = arith.constant 0 : i32
    return %arg0, %c0_i32 : i32, i32
  }
}

</mosaic_0001>

<bundles_post_ra>
// kernel: tpu_custom_call.1
= control target key start
LH: loop header
LB: loop body
LE: loop exit
PB: predicated region body
PF: predicated region fallthrough
CT: control target
= control target key end

     0   :  { %s4749_s0 = inlined_call_operand.hbm [shape: f32[16,1024], index: 0, kind: input, shape index: {}]   ;;  %s4750_s1 = inlined_call_operand.hbm [shape: bf16[1024,512], index: 1, kind: input, shape index: {}]   ;;  %s4751_s2 = inlined_call_operand.vmem [shape: f32[1,512], index: 2, kind: input, shape index: {}]   ;;  %s4752_s3 = inlined_call_operand.hbm [shape: bf16[512,512], index: 3, kind: input, shape index: {}]   ;;  %s4753_s4 = inlined_call_operand.vmem [shape: f32[1,512], index: 4, kind: input, shape index: {}]   ;;  %s4754_s5 = inlined_call_operand.hbm [shape: bf16[512,128], index: 5, kind: input, shape index: {}]   ;;  %s4755_s6 = inlined_call_operand.vmem [shape: f32[1,128], index: 6, kind: input, shape index: {}]   ;;  %s4756_s7 = inlined_call_operand.vmem [shape: f32[1,128], index: 7, kind: input, shape index: {}]   ;;  %s4757_s8 = inlined_call_operand.<no memory space> [shape: f32[1,1], index: 8, kind: input, shape index: {}]   ;;  %s4758_s9 = inlined_call_operand.vmem [shape: f32[16,1], index: 9, kind: output, shape index: {}]  }
   0x1   :  { %v14_v0 = vstv %s4757_s8 }
   0x2   :  { %15 = vst [vmem:[#allocation2] sm:$0x1] %v14_v0 }
   0x3   :  { %16 = vsyncpa [#allocation4], 0 }
   0x4   :  { %17 = vsyncpa [#allocation6], 0 }
   0x5   :  { %18 = vsyncpa [#allocation9], 0  ;;  %s4583_s11 = smov [#allocation5]  }
   0x6   :  { %s36_s12 = sshll.u32 %s4583_s11, 4  ;;  %s37_s12 = int_to_ptr.vmem [resolvable:$true] %s36_s12 }
   0x7   :  { %s4505_s13 = scalar_lea.vmem %s37_s12, 32768  ;;  %p4510_p1 = scmp.lt.s32.totalorder %s37_s12, %s37_s12 }
   0x8   :  { %p4506_p0 = scmp.ne.s32.totalorder %s37_s12, %s4505_s13  ;;  %p4511_p2 = scmp.lt.s32.totalorder %s4505_s13, %s4505_s13 }
   0xa   :  { %p4512_p3 = por %p4511_p2, %p4510_p1 }
   0xc   :  { %p4513_p4 = pnand %p4512_p3, %p4506_p0 }
   0xe   :  { %4516 = shalt.err (!%p4513_p4)
}
   0xf   :  { %s4584_s14 = smov 256   ;;  %s4585_s15 = smov 16  }
  0x10   :  { %42 = dma.hbm_to_vmem [thread:$0]  %s4750_s1, 32768, %s37_s12, [#allocation6], %s4584_s14, %s4584_s14, %s4585_s15  }
  0x11   :  { %s4586_s17 = smov [#allocation3]  }
  0x12   :  { %s24_s18 = sshll.u32 %s4586_s17, 4  ;;  %s25_s18 = int_to_ptr.vmem [resolvable:$true] %s24_s18 }
  0x13   :  { %s4525_s19 = scalar_lea.vmem %s25_s18, 2048  ;;  %p4530_p6 = scmp.lt.s32.totalorder %s25_s18, %s25_s18 }
  0x14   :  { %p4526_p5 = scmp.ne.s32.totalorder %s25_s18, %s4525_s19  ;;  %p4531_p7 = scmp.lt.s32.totalorder %s4525_s19, %s4525_s19 }
  0x16   :  { %p4532_p8 = por %p4531_p7, %p4530_p6 }
  0x18   :  { %p4533_p9 = pnand %p4532_p8, %p4526_p5 }
  0x1a   :  { %4536 = shalt.err (!%p4533_p9)
}
  0x1b   :  { %s4587_s20 = smov 1024   ;;  %s4588_s21 = smov 64  }
  0x1c   :  { %30 = dma.hbm_to_vmem [thread:$0]  %s4749_s0, 2048, %s25_s18, [#allocation4], %s4587_s20, %s4587_s20, %s4588_s21  }
  0x1d   :  { %s4589_s24 = smov [#allocation7]   ;;  %s4590_s26 = smov [#allocation8]  }
  0x1e   :  { %s50_s25 = sshll.u32 %s4589_s24, 4  ;;  %s64_s1 = sshll.u32 %s4590_s26, 4  ;;  %s51_s25 = int_to_ptr.vmem [resolvable:$true] %s50_s25  ;;  %s65_s1 = int_to_ptr.vmem [resolvable:$true] %s64_s1 }
  0x1f   :  { %s4545_s27 = scalar_lea.vmem %s51_s25, 16384  ;;  %p4550_p11 = scmp.lt.s32.totalorder %s51_s25, %s51_s25 }
  0x20   :  { %p4546_p10 = scmp.ne.s32.totalorder %s51_s25, %s4545_s27  ;;  %p4551_p12 = scmp.lt.s32.totalorder %s4545_s27, %s4545_s27 }
  0x22   :  { %p4552_p13 = por %p4551_p12, %p4550_p11 }
  0x24   :  { %p4553_p0 = pnand %p4552_p13, %p4546_p10 }
  0x26   :  { %4556 = shalt.err (!%p4553_p0)
}
  0x27   :  { %56 = dma.hbm_to_vmem [thread:$0]  %s4752_s3, 16384, %s51_s25, [#allocation6], %s4584_s14, %s4584_s14, %s4585_s15  }
  0x28   :  { %s4565_s0 = scalar_lea.vmem %s65_s1, 4096  ;;  %p4570_p2 = scmp.lt.s32.totalorder %s65_s1, %s65_s1 }
  0x29   :  { %p4566_p1 = scmp.ne.s32.totalorder %s65_s1, %s4565_s0  ;;  %p4571_p3 = scmp.lt.s32.totalorder %s4565_s0, %s4565_s0 }
  0x2b   :  { %p4572_p4 = por %p4571_p3, %p4570_p2 }
  0x2d   :  { %p4573_p5 = pnand %p4572_p4, %p4566_p1 }
  0x2f   :  { %4576 = shalt.err (!%p4573_p5)
}
  0x30   :  { %s4591_s30 = smov 4  }
  0x31   :  { %70 = dma.hbm_to_vmem [thread:$0]  %s4754_s5, 4096, %s65_s1, [#allocation9], %s4588_s21, %s4588_s21, %s4591_s30  }
  0x32   :  { %4577 = dma.done.wait [#allocation4], 2048  }
  0x33   :  { %4578 = vsyncadd [#allocation4], 4294965248 }
  0x34   :  { %4579 = dma.done.wait [#allocation6], 49152  }
  0x35   :  { %4580 = vsyncadd [#allocation6], 4294918144 }
  0x36   :  { %4581 = dma.done.wait [#allocation9], 4096  }
  0x37   :  { %4582 = vsyncadd [#allocation9], 4294963200  ;;  %v3889_v1 = vld [vmem:[#allocation5 + $0xe4] ss:$16 sps:$4 sm:$0xff]   ;;  %v3893_v3 = vld [vmem:[#allocation5 + $0xe0] ss:$16 sps:$4 sm:$0xff]  }
  0x38   :  { %v3891_v2 = vld [vmem:[#allocation5 + $0x2e4] ss:$16 sps:$4 sm:$0xff]   ;;  %1672 = vmatprep.subr.bf16.mxu0 %v3889_v1  ;;  %v3894_v4 = vld [vmem:[#allocation5 + $0x2e0] ss:$16 sps:$4 sm:$0xff]   ;;  %v91_v47 = vld [vmem:[#allocation3 + $0x8] sm:$0xff] }
  0x39   :  { %1715 = vmatprep.subr.bf16.mxu1 %v3891_v2  ;;  %v3895_v5 = vld [vmem:[#allocation5 + $0xc4] ss:$16 sps:$4 sm:$0xff]   ;;  %1673 = vmatpush1.bf16.msra.mxu0 %v3893_v3  ;;  %v3899_v7 = vld [vmem:[#allocation5 + $0xc0] ss:$16 sps:$4 sm:$0xff]   ;;  %v99_v48 = vld [vmem:[#allocation3 + $0x48] sm:$0xff] }
  0x3a   :  { %1716 = vmatpush1.bf16.msra.mxu1 %v3894_v4  ;;  %v3897_v6 = vld [vmem:[#allocation5 + $0x2c4] ss:$16 sps:$4 sm:$0xff]   ;;  %1674 = vmatprep.subr.bf16.mxu0 %v3895_v5  ;;  %v3900_v8 = vld [vmem:[#allocation5 + $0x2c0] ss:$16 sps:$4 sm:$0xff]   ;;  %v93_v49 = vld [vmem:[#allocation3 + $0x18] sm:$0xff]  ;;  %v4663_v54 = vpack.c.bf16 %v99_v48, %v91_v47 }
  0x3b   :  { %1717 = vmatprep.subr.bf16.mxu1 %v3897_v6  ;;  %v3901_v9 = vld [vmem:[#allocation5 + $0xa4] ss:$16 sps:$4 sm:$0xff]   ;;  %v3905_v11 = vld [vmem:[#allocation5 + $0xa0] ss:$16 sps:$4 sm:$0xff]   ;;  %v101_v50 = vld [vmem:[#allocation3 + $0x58] sm:$0xff] }
  0x3c   :  { %v3903_v10 = vld [vmem:[#allocation5 + $0x2a4] ss:$16 sps:$4 sm:$0xff]   ;;  %v3906_v12 = vld [vmem:[#allocation5 + $0x2a0] ss:$16 sps:$4 sm:$0xff]   ;;  %v4665_v55 = vpack.c.bf16 %v101_v50, %v93_v49  ;;  %1704 = vmatprep.mubr.bf16.mxu0 %v4663_v54  ;;  %v105_v47 = vld [vmem:[#allocation3 + $0x78] sm:$0xff] }
  0x3d   :  { %1675 = vmatpush1.bf16.msra.mxu0 %v3899_v7  ;;  %v3907_v13 = vld [vmem:[#allocation5 + $0x84] ss:$16 sps:$4 sm:$0xff]   ;;  %v3911_v15 = vld [vmem:[#allocation5 + $0x80] ss:$16 sps:$4 sm:$0xff]  }
  0x3e   :  { %1718 = vmatpush1.bf16.msra.mxu1 %v3900_v8  ;;  %1676 = vmatprep.subr.bf16.mxu0 %v3901_v9  ;;  %v3909_v14 = vld [vmem:[#allocation5 + $0x284] ss:$16 sps:$4 sm:$0xff]   ;;  %v3912_v16 = vld [vmem:[#allocation5 + $0x280] ss:$16 sps:$4 sm:$0xff]  }
  0x3f   :  { %1719 = vmatprep.subr.bf16.mxu1 %v3903_v10  ;;  %v3913_v17 = vld [vmem:[#allocation5 + $0x64] ss:$16 sps:$4 sm:$0xff]   ;;  %v3917_v19 = vld [vmem:[#allocation5 + $0x60] ss:$16 sps:$4 sm:$0xff]   ;;  %1747 = vmatprep.mubr.bf16.mxu1 %v4665_v55 }
  0x40   :  { %v3915_v18 = vld [vmem:[#allocation5 + $0x264] ss:$16 sps:$4 sm:$0xff]   ;;  %v3918_v20 = vld [vmem:[#allocation5 + $0x260] ss:$16 sps:$4 sm:$0xff]  }
  0x41   :  { %1677 = vmatpush1.bf16.msra.mxu0 %v3905_v11  ;;  %v3919_v21 = vld [vmem:[#allocation5 + $0x44] ss:$16 sps:$4 sm:$0xff]   ;;  %v3923_v23 = vld [vmem:[#allocation5 + $0x40] ss:$16 sps:$4 sm:$0xff]  }
  0x42   :  { %1720 = vmatpush1.bf16.msra.mxu1 %v3906_v12  ;;  %1678 = vmatprep.subr.bf16.mxu0 %v3907_v13  ;;  %v3921_v22 = vld [vmem:[#allocation5 + $0x244] ss:$16 sps:$4 sm:$0xff]   ;;  %v3924_v24 = vld [vmem:[#allocation5 + $0x240] ss:$16 sps:$4 sm:$0xff]  }
  0x43   :  { %1721 = vmatprep.subr.bf16.mxu1 %v3909_v14  ;;  %v3925_v25 = vld [vmem:[#allocation5 + $0x24] ss:$16 sps:$4 sm:$0xff]   ;;  %v3929_v27 = vld [vmem:[#allocation5 + $0x20] ss:$16 sps:$4 sm:$0xff]  }
  0x44   :  { %v3927_v26 = vld [vmem:[#allocation5 + $0x224] ss:$16 sps:$4 sm:$0xff]   ;;  %v3930_v28 = vld [vmem:[#allocation5 + $0x220] ss:$16 sps:$4 sm:$0xff]  }
  0x45   :  { %1679 = vmatpush1.bf16.msra.mxu0 %v3911_v15  ;;  %v3931_v29 = vld [vmem:[#allocation5 + $0x4] ss:$16 sps:$4 sm:$0xff]   ;;  %v3935_v31 = vld [vmem:[#allocation5] ss:$16 sps:$4 sm:$0xff]  }
  0x46   :  { %1722 = vmatpush1.bf16.msra.mxu1 %v3912_v16  ;;  %1680 = vmatprep.subr.bf16.mxu0 %v3913_v17  ;;  %v3933_v30 = vld [vmem:[#allocation5 + $0x204] ss:$16 sps:$4 sm:$0xff]   ;;  %v3936_v32 = vld [vmem:[#allocation5 + $0x200] ss:$16 sps:$4 sm:$0xff]  }
  0x47   :  { %1723 = vmatprep.subr.bf16.mxu1 %v3915_v18  ;;  %v3937_v33 = vld [vmem:[#allocation5 + $0x1e4] ss:$16 sps:$4 sm:$0xff]   ;;  %v3941_v35 = vld [vmem:[#allocation5 + $0x1e0] ss:$16 sps:$4 sm:$0xff]  }
  0x48   :  { %v3939_v34 = vld [vmem:[#allocation5 + $0x3e4] ss:$16 sps:$4 sm:$0xff]   ;;  %v3942_v36 = vld [vmem:[#allocation5 + $0x3e0] ss:$16 sps:$4 sm:$0xff]  }
  0x49   :  { %1681 = vmatpush1.bf16.msra.mxu0 %v3917_v19  ;;  %v3943_v37 = vld [vmem:[#allocation5 + $0x1c4] ss:$16 sps:$4 sm:$0xff]   ;;  %v3947_v39 = vld [vmem:[#allocation5 + $0x1c0] ss:$16 sps:$4 sm:$0xff]  }
  0x4a   :  { %1724 = vmatpush1.bf16.msra.mxu1 %v3918_v20  ;;  %1682 = vmatprep.subr.bf16.mxu0 %v3919_v21  ;;  %v3945_v38 = vld [vmem:[#allocation5 + $0x3c4] ss:$16 sps:$4 sm:$0xff]   ;;  %v3948_v40 = vld [vmem:[#allocation5 + $0x3c0] ss:$16 sps:$4 sm:$0xff]  }
  0x4b   :  { %1725 = vmatprep.subr.bf16.mxu1 %v3921_v22  ;;  %v3949_v41 = vld [vmem:[#allocation5 + $0x1a4] ss:$16 sps:$4 sm:$0xff]   ;;  %v3953_v43 = vld [vmem:[#allocation5 + $0x1a0] ss:$16 sps:$4 sm:$0xff]  }
  0x4c   :  { %v3951_v42 = vld [vmem:[#allocation5 + $0x3a4] ss:$16 sps:$4 sm:$0xff]   ;;  %v3954_v44 = vld [vmem:[#allocation5 + $0x3a0] ss:$16 sps:$4 sm:$0xff]  }
  0x4d   :  { %1683 = vmatpush1.bf16.msra.mxu0 %v3923_v23  ;;  %v3955_v45 = vld [vmem:[#allocation5 + $0x184] ss:$16 sps:$4 sm:$0xff]   ;;  %v3959_v51 = vld [vmem:[#allocation5 + $0x180] ss:$16 sps:$4 sm:$0xff]  }
  0x4e   :  { %1726 = vmatpush1.bf16.msra.mxu1 %v3924_v24  ;;  %1684 = vmatprep.subr.bf16.mxu0 %v3925_v25  ;;  %v3957_v46 = vld [vmem:[#allocation5 + $0x384] ss:$16 sps:$4 sm:$0xff]   ;;  %v3960_v52 = vld [vmem:[#allocation5 + $0x380] ss:$16 sps:$4 sm:$0xff]  }
  0x4f   :  { %1727 = vmatprep.subr.bf16.mxu1 %v3927_v26  ;;  %v3961_v53 = vld [vmem:[#allocation5 + $0x164] ss:$16 sps:$4 sm:$0xff]   ;;  %v3965_v57 = vld [vmem:[#allocation5 + $0x160] ss:$16 sps:$4 sm:$0xff]  }
  0x50   :  { %v3963_v56 = vld [vmem:[#allocation5 + $0x364] ss:$16 sps:$4 sm:$0xff]   ;;  %v3966_v58 = vld [vmem:[#allocation5 + $0x360] ss:$16 sps:$4 sm:$0xff]  }
  0x51   :  { %1685 = vmatpush1.bf16.msra.mxu0 %v3929_v27  ;;  %v3967_v59 = vld [vmem:[#allocation5 + $0x144] ss:$16 sps:$4 sm:$0xff]   ;;  %v3971_v61 = vld [vmem:[#allocation5 + $0x140] ss:$16 sps:$4 sm:$0xff]  }
  0x52   :  { %1728 = vmatpush1.bf16.msra.mxu1 %v3930_v28  ;;  %1686 = vmatprep.subr.bf16.mxu0 %v3931_v29  ;;  %v3969_v60 = vld [vmem:[#allocation5 + $0x344] ss:$16 sps:$4 sm:$0xff]   ;;  %v3972_v62 = vld [vmem:[#allocation5 + $0x340] ss:$16 sps:$4 sm:$0xff]  }
  0x53   :  { %1729 = vmatprep.subr.bf16.mxu1 %v3933_v30  ;;  %v3973_v63 = vld [vmem:[#allocation5 + $0x124] ss:$16 sps:$4 sm:$0xff]   ;;  %v3977_v1 = vld [vmem:[#allocation5 + $0x120] ss:$16 sps:$4 sm:$0xff]  }
  0x54   :  { %v3975_v0 = vld [vmem:[#allocation5 + $0x324] ss:$16 sps:$4 sm:$0xff]   ;;  %v3978_v2 = vld [vmem:[#allocation5 + $0x320] ss:$16 sps:$4 sm:$0xff]  }
  0x55   :  { %1687 = vmatpush1.bf16.msra.mxu0 %v3935_v31  ;;  %v3979_v3 = vld [vmem:[#allocation5 + $0x104] ss:$16 sps:$4 sm:$0xff]   ;;  %v3983_v5 = vld [vmem:[#allocation5 + $0x100] ss:$16 sps:$4 sm:$0xff]  }
  0x56   :  { %1730 = vmatpush1.bf16.msra.mxu1 %v3936_v32  ;;  %1688 = vmatprep.subr.bf16.mxu0 %v3937_v33  ;;  %v3981_v4 = vld [vmem:[#allocation5 + $0x304] ss:$16 sps:$4 sm:$0xff]   ;;  %v3984_v6 = vld [vmem:[#allocation5 + $0x300] ss:$16 sps:$4 sm:$0xff]  }
  0x57   :  { %1731 = vmatprep.subr.bf16.mxu1 %v3939_v34  ;;  %v90_v7 = vld [vmem:[#allocation3] sm:$0xff]  ;;  %v92_v9 = vld [vmem:[#allocation3 + $0x10] sm:$0xff] }
  0x58   :  { %v98_v8 = vld [vmem:[#allocation3 + $0x40] sm:$0xff]  ;;  %v100_v10 = vld [vmem:[#allocation3 + $0x50] sm:$0xff] }
  0x59   :  { %1689 = vmatpush2.bf16.msra.mxu0 %v3941_v35  ;;  %v3987_v11 = vld [vmem:[#allocation5 + $0x4e4] ss:$16 sps:$4 sm:$0xff]   ;;  %v4669_v13 = vpack.c.bf16 %v98_v8, %v90_v7  ;;  %v4671_v14 = vpack.c.bf16 %v100_v10, %v92_v9  ;;  %v3985_v15 = vld [vmem:[#allocation5 + $0x4e0] ss:$16 sps:$4 sm:$0xff]  }
  0x5a   :  { %1732 = vmatpush2.bf16.msra.mxu1 %v3942_v36  ;;  %1690 = vmatprep.subr.bf16.mxu0 %v3943_v37  ;;  %v3990_v12 = vld [vmem:[#allocation5 + $0x6e4] ss:$16 sps:$4 sm:$0xff]   ;;  %v3988_v16 = vld [vmem:[#allocation5 + $0x6e0] ss:$16 sps:$4 sm:$0xff]  }
  0x5b   :  { %1733 = vmatprep.subr.bf16.mxu1 %v3945_v38  ;;  %v3993_v17 = vld [vmem:[#allocation5 + $0x4c4] ss:$16 sps:$4 sm:$0xff]   ;;  %v3991_v19 = vld [vmem:[#allocation5 + $0x4c0] ss:$16 sps:$4 sm:$0xff]  }
  0x5c   :  { %v3996_v18 = vld [vmem:[#allocation5 + $0x6c4] ss:$16 sps:$4 sm:$0xff]   ;;  %v3994_v20 = vld [vmem:[#allocation5 + $0x6c0] ss:$16 sps:$4 sm:$0xff]  }
  0x5d   :  { %1691 = vmatpush2.bf16.msra.mxu0 %v3947_v39  ;;  %v3999_v21 = vld [vmem:[#allocation5 + $0x4a4] ss:$16 sps:$4 sm:$0xff]   ;;  %v3997_v23 = vld [vmem:[#allocation5 + $0x4a0] ss:$16 sps:$4 sm:$0xff]  }
  0x5e   :  { %1734 = vmatpush2.bf16.msra.mxu1 %v3948_v40  ;;  %1692 = vmatprep.subr.bf16.mxu0 %v3949_v41  ;;  %v4002_v22 = vld [vmem:[#allocation5 + $0x6a4] ss:$16 sps:$4 sm:$0xff]   ;;  %v4000_v24 = vld [vmem:[#allocation5 + $0x6a0] ss:$16 sps:$4 sm:$0xff]   ;;  %v95_v41 = vld [vmem:[#allocation3 + $0x28] sm:$0xff] }
  0x5f   :  { %1735 = vmatprep.subr.bf16.mxu1 %v3951_v42  ;;  %v4005_v25 = vld [vmem:[#allocation5 + $0x484] ss:$16 sps:$4 sm:$0xff]   ;;  %v4003_v27 = vld [vmem:[#allocation5 + $0x480] ss:$16 sps:$4 sm:$0xff]   ;;  %v103_v42 = vld [vmem:[#allocation3 + $0x68] sm:$0xff] }
  0x60   :  { %v4008_v26 = vld [vmem:[#allocation5 + $0x684] ss:$16 sps:$4 sm:$0xff]   ;;  %v4006_v28 = vld [vmem:[#allocation5 + $0x680] ss:$16 sps:$4 sm:$0xff]  }
  0x61   :  { %1693 = vmatpush2.bf16.msra.mxu0 %v3953_v43  ;;  %v4011_v29 = vld [vmem:[#allocation5 + $0x464] ss:$16 sps:$4 sm:$0xff]   ;;  %v4009_v31 = vld [vmem:[#allocation5 + $0x460] ss:$16 sps:$4 sm:$0xff]   ;;  %v97_v43 = vld [vmem:[#allocation3 + $0x38] sm:$0xff] }
  0x62   :  { %1736 = vmatpush2.bf16.msra.mxu1 %v3954_v44  ;;  %1694 = vmatprep.subr.bf16.mxu0 %v3955_v45  ;;  %v4014_v30 = vld [vmem:[#allocation5 + $0x664] ss:$16 sps:$4 sm:$0xff]   ;;  %v4012_v32 = vld [vmem:[#allocation5 + $0x660] ss:$16 sps:$4 sm:$0xff]   ;;  %v4677_v48 = vpack.c.bf16 %v105_v47, %v97_v43  ;;  %v4099_v43 = vld [vmem:[#allocation5 + $0x88] ss:$16 sps:$4 sm:$0xff]  }
  0x63   :  { %1737 = vmatprep.subr.bf16.mxu1 %v3957_v46  ;;  %v4017_v33 = vld [vmem:[#allocation5 + $0x444] ss:$16 sps:$4 sm:$0xff]   ;;  %v4015_v35 = vld [vmem:[#allocation5 + $0x440] ss:$16 sps:$4 sm:$0xff]   ;;  %v4675_v46 = vpack.c.bf16 %v103_v42, %v95_v41  ;;  %v4101_v41 = vld [vmem:[#allocation5 + $0x8c] ss:$16 sps:$4 sm:$0xff]  }
  0x64   :  { %v4020_v34 = vld [vmem:[#allocation5 + $0x644] ss:$16 sps:$4 sm:$0xff]   ;;  %v4018_v36 = vld [vmem:[#allocation5 + $0x640] ss:$16 sps:$4 sm:$0xff]   ;;  %v4104_v42 = vld [vmem:[#allocation5 + $0x28c] ss:$16 sps:$4 sm:$0xff]  }
  0x65   :  { %1695 = vmatpush2.bf16.msra.mxu0 %v3959_v51  ;;  %v4023_v37 = vld [vmem:[#allocation5 + $0x424] ss:$16 sps:$4 sm:$0xff]   ;;  %v4021_v39 = vld [vmem:[#allocation5 + $0x420] ss:$16 sps:$4 sm:$0xff]   ;;  %v4110_v47 = vld [vmem:[#allocation5 + $0x26c] ss:$16 sps:$4 sm:$0xff]  }
  0x66   :  { %1738 = vmatpush2.bf16.msra.mxu1 %v3960_v52  ;;  %1696 = vmatprep.subr.bf16.mxu0 %v3961_v53  ;;  %v4026_v38 = vld [vmem:[#allocation5 + $0x624] ss:$16 sps:$4 sm:$0xff]   ;;  %v4024_v40 = vld [vmem:[#allocation5 + $0x620] ss:$16 sps:$4 sm:$0xff]  }
  0x67   :  { %1739 = vmatprep.subr.bf16.mxu1 %v3963_v56  ;;  %v4029_v44 = vld [vmem:[#allocation5 + $0x404] ss:$16 sps:$4 sm:$0xff]   ;;  %v4027_v49 = vld [vmem:[#allocation5 + $0x400] ss:$16 sps:$4 sm:$0xff]  }
  0x68   :  { %v4032_v45 = vld [vmem:[#allocation5 + $0x604] ss:$16 sps:$4 sm:$0xff]   ;;  %v4030_v50 = vld [vmem:[#allocation5 + $0x600] ss:$16 sps:$4 sm:$0xff]  }
  0x69   :  { %1697 = vmatpush2.bf16.msra.mxu0 %v3965_v57  ;;  %v4035_v51 = vld [vmem:[#allocation5 + $0x5e4] ss:$16 sps:$4 sm:$0xff]   ;;  %v4033_v53 = vld [vmem:[#allocation5 + $0x5e0] ss:$16 sps:$4 sm:$0xff]  }
  0x6a   :  { %1740 = vmatpush2.bf16.msra.mxu1 %v3966_v58  ;;  %1698 = vmatprep.subr.bf16.mxu0 %v3967_v59  ;;  %v4038_v52 = vld [vmem:[#allocation5 + $0x7e4] ss:$16 sps:$4 sm:$0xff]   ;;  %v4036_v56 = vld [vmem:[#allocation5 + $0x7e0] ss:$16 sps:$4 sm:$0xff]  }
  0x6b   :  { %1741 = vmatprep.subr.bf16.mxu1 %v3969_v60  ;;  %v4041_v57 = vld [vmem:[#allocation5 + $0x5c4] ss:$16 sps:$4 sm:$0xff]   ;;  %v4039_v59 = vld [vmem:[#allocation5 + $0x5c0] ss:$16 sps:$4 sm:$0xff]  }
  0x6c   :  { %v4044_v58 = vld [vmem:[#allocation5 + $0x7c4] ss:$16 sps:$4 sm:$0xff]   ;;  %v4042_v60 = vld [vmem:[#allocation5 + $0x7c0] ss:$16 sps:$4 sm:$0xff]  }
  0x6d   :  { %1699 = vmatpush2.bf16.msra.mxu0 %v3971_v61  ;;  %v4047_v61 = vld [vmem:[#allocation5 + $0x5a4] ss:$16 sps:$4 sm:$0xff]   ;;  %v4057_v7 = vld [vmem:[#allocation5 + $0x560] ss:$16 sps:$4 sm:$0xff]  }
  0x6e   :  { %1742 = vmatpush2.bf16.msra.mxu1 %v3972_v62  ;;  %1700 = vmatprep.subr.bf16.mxu0 %v3973_v63  ;;  %v4050_v62 = vld [vmem:[#allocation5 + $0x7a4] ss:$16 sps:$4 sm:$0xff]   ;;  %v4045_v63 = vld [vmem:[#allocation5 + $0x5a0] ss:$16 sps:$4 sm:$0xff]  }
  0x6f   :  { %1743 = vmatprep.subr.bf16.mxu1 %v3975_v0  ;;  %v4048_v0 = vld [vmem:[#allocation5 + $0x7a0] ss:$16 sps:$4 sm:$0xff]   ;;  %v4065_v9 = vld [vmem:[#allocation5 + $0x544] ss:$16 sps:$4 sm:$0xff]  }
  0x70   :  { %v4060_v8 = vld [vmem:[#allocation5 + $0x760] ss:$16 sps:$4 sm:$0xff]   ;;  %v4068_v10 = vld [vmem:[#allocation5 + $0x744] ss:$16 sps:$4 sm:$0xff]  }
  0x71   :  { %1701 = vmatpush2.bf16.msra.mxu0 %v3977_v1  ;;  %v4053_v1 = vld [vmem:[#allocation5 + $0x584] ss:$16 sps:$4 sm:$0xff]  }
  0x72   :  { %1744 = vmatpush2.bf16.msra.mxu1 %v3978_v2  ;;  %1702 = vmatprep.subr.bf16.mxu0 %v3979_v3  ;;  %v4056_v2 = vld [vmem:[#allocation5 + $0x784] ss:$16 sps:$4 sm:$0xff]   ;;  %v4051_v3 = vld [vmem:[#allocation5 + $0x580] ss:$16 sps:$4 sm:$0xff]  }
  0x73   :  { %1745 = vmatprep.subr.bf16.mxu1 %v3981_v4  ;;  %v4054_v4 = vld [vmem:[#allocation5 + $0x780] ss:$16 sps:$4 sm:$0xff]  }
  0x75   :  { %1703 = vmatpush2.bf16.msra.mxu0 %v3983_v5  ;;  %v4059_v5 = vld [vmem:[#allocation5 + $0x564] ss:$16 sps:$4 sm:$0xff]  }
  0x76   :  { %1746 = vmatpush2.bf16.msra.mxu1 %v3984_v6  ;;  %1758 = vmatprep.subr.bf16.mxu0 %v3987_v11  ;;  %v4062_v6 = vld [vmem:[#allocation5 + $0x764] ss:$16 sps:$4 sm:$0xff]   ;;  %v4063_v11 = vld [vmem:[#allocation5 + $0x540] ss:$16 sps:$4 sm:$0xff]  }
  0x77   :  { %1801 = vmatprep.subr.bf16.mxu1 %v3990_v12  ;;  %v4066_v12 = vld [vmem:[#allocation5 + $0x740] ss:$16 sps:$4 sm:$0xff]  }
  0x78   :  { %1705 = vmatmul.mubr.bf16.vlgmr.msra.gmra.mxu0 %v4669_v13 }
  0x79   :  { %1748 = vmatmul.mubr.bf16.vlgmr.msra.gmra.mxu1 %v4671_v14  ;;  %1759 = vmatpush1.bf16.msra.mxu0 %v3985_v15  ;;  %v4071_v15 = vld [vmem:[#allocation5 + $0x524] ss:$16 sps:$4 sm:$0xff]  }
  0x7a   :  { %1802 = vmatpush1.bf16.msra.mxu1 %v3988_v16  ;;  %1760 = vmatprep.subr.bf16.mxu0 %v3993_v17  ;;  %v4074_v16 = vld [vmem:[#allocation5 + $0x724] ss:$16 sps:$4 sm:$0xff]   ;;  %v4069_v17 = vld [vmem:[#allocation5 + $0x520] ss:$16 sps:$4 sm:$0xff]  }
  0x7b   :  { %1803 = vmatprep.subr.bf16.mxu1 %v3996_v18  ;;  %1790 = vmatprep.mubr.bf16.mxu0 %v4675_v46  ;;  %v4072_v18 = vld [vmem:[#allocation5 + $0x720] ss:$16 sps:$4 sm:$0xff]  }
  0x7c   :  { %1833 = vmatprep.mubr.bf16.mxu1 %v4677_v48 }
  0x7d   :  { %1761 = vmatpush1.bf16.msra.mxu0 %v3991_v19  ;;  %v4077_v19 = vld [vmem:[#allocation5 + $0x504] ss:$16 sps:$4 sm:$0xff]  }
  0x7e   :  { %1804 = vmatpush1.bf16.msra.mxu1 %v3994_v20  ;;  %1762 = vmatprep.subr.bf16.mxu0 %v3999_v21  ;;  %v4080_v20 = vld [vmem:[#allocation5 + $0x704] ss:$16 sps:$4 sm:$0xff]   ;;  %v4075_v21 = vld [vmem:[#allocation5 + $0x500] ss:$16 sps:$4 sm:$0xff]  }
  0x7f   :  { %1805 = vmatprep.subr.bf16.mxu1 %v4002_v22  ;;  %v4078_v22 = vld [vmem:[#allocation5 + $0x700] ss:$16 sps:$4 sm:$0xff]  }
  0x81   :  { %1763 = vmatpush1.bf16.msra.mxu0 %v3997_v23  ;;  %v94_v23 = vld [vmem:[#allocation3 + $0x20] sm:$0xff] }
  0x82   :  { %1806 = vmatpush1.bf16.msra.mxu1 %v4000_v24  ;;  %1764 = vmatprep.subr.bf16.mxu0 %v4005_v25  ;;  %v102_v24 = vld [vmem:[#allocation3 + $0x60] sm:$0xff]  ;;  %v96_v25 = vld [vmem:[#allocation3 + $0x30] sm:$0xff] }
  0x83   :  { %1807 = vmatprep.subr.bf16.mxu1 %v4008_v26  ;;  %v104_v26 = vld [vmem:[#allocation3 + $0x70] sm:$0xff] }
  0x85   :  { %1765 = vmatpush1.bf16.msra.mxu0 %v4003_v27  ;;  %v4083_v27 = vld [vmem:[#allocation5 + $0xec] ss:$16 sps:$4 sm:$0xff]  }
  0x86   :  { %1808 = vmatpush1.bf16.msra.mxu1 %v4006_v28  ;;  %1766 = vmatprep.subr.bf16.mxu0 %v4011_v29  ;;  %v4086_v28 = vld [vmem:[#allocation5 + $0x2ec] ss:$16 sps:$4 sm:$0xff]   ;;  %v4681_v29 = vpack.c.bf16 %v102_v24, %v94_v23  ;;  %v4159_v23 = vld [vmem:[#allocation5 + $0x148] ss:$16 sps:$4 sm:$0xff]  }
  0x87   :  { %1809 = vmatprep.subr.bf16.mxu1 %v4014_v30  ;;  %v4683_v30 = vpack.c.bf16 %v104_v26, %v96_v25  ;;  %v4162_v24 = vld [vmem:[#allocation5 + $0x348] ss:$16 sps:$4 sm:$0xff]   ;;  %v4167_v25 = vld [vmem:[#allocation5 + $0x12c] ss:$16 sps:$4 sm:$0xff]  }
  0x88   :  { %v4170_v26 = vld [vmem:[#allocation5 + $0x32c] ss:$16 sps:$4 sm:$0xff]  }
  0x89   :  { %1767 = vmatpush1.bf16.msra.mxu0 %v4009_v31  ;;  %v4081_v31 = vld [vmem:[#allocation5 + $0xe8] ss:$16 sps:$4 sm:$0xff]  }
  0x8a   :  { %1810 = vmatpush1.bf16.msra.mxu1 %v4012_v32  ;;  %1768 = vmatprep.subr.bf16.mxu0 %v4017_v33  ;;  %v4084_v32 = vld [vmem:[#allocation5 + $0x2e8] ss:$16 sps:$4 sm:$0xff]   ;;  %v4089_v33 = vld [vmem:[#allocation5 + $0xcc] ss:$16 sps:$4 sm:$0xff]  }
  0x8b   :  { %1811 = vmatprep.subr.bf16.mxu1 %v4020_v34  ;;  %v4092_v34 = vld [vmem:[#allocation5 + $0x2cc] ss:$16 sps:$4 sm:$0xff]  }
  0x8d   :  { %1769 = vmatpush1.bf16.msra.mxu0 %v4015_v35  ;;  %v4087_v35 = vld [vmem:[#allocation5 + $0xc8] ss:$16 sps:$4 sm:$0xff]  }
  0x8e   :  { %1812 = vmatpush1.bf16.msra.mxu1 %v4018_v36  ;;  %1770 = vmatprep.subr.bf16.mxu0 %v4023_v37  ;;  %v4090_v36 = vld [vmem:[#allocation5 + $0x2c8] ss:$16 sps:$4 sm:$0xff]   ;;  %v4095_v37 = vld [vmem:[#allocation5 + $0xac] ss:$16 sps:$4 sm:$0xff]  }
  0x8f   :  { %1813 = vmatprep.subr.bf16.mxu1 %v4026_v38  ;;  %v4098_v38 = vld [vmem:[#allocation5 + $0x2ac] ss:$16 sps:$4 sm:$0xff]  }
  0x91   :  { %1771 = vmatpush1.bf16.msra.mxu0 %v4021_v39  ;;  %v4093_v39 = vld [vmem:[#allocation5 + $0xa8] ss:$16 sps:$4 sm:$0xff]  }
  0x92   :  { %1814 = vmatpush1.bf16.msra.mxu1 %v4024_v40  ;;  %1772 = vmatprep.subr.bf16.mxu0 %v4029_v44  ;;  %v4096_v40 = vld [vmem:[#allocation5 + $0x2a8] ss:$16 sps:$4 sm:$0xff]  }
  0x93   :  { %1815 = vmatprep.subr.bf16.mxu1 %v4032_v45  ;;  %v4102_v44 = vld [vmem:[#allocation5 + $0x288] ss:$16 sps:$4 sm:$0xff]   ;;  %v4107_v45 = vld [vmem:[#allocation5 + $0x6c] ss:$16 sps:$4 sm:$0xff]  }
  0x95   :  { %1773 = vmatpush1.bf16.msra.mxu0 %v4027_v49  ;;  %v4105_v49 = vld [vmem:[#allocation5 + $0x68] ss:$16 sps:$4 sm:$0xff]  }
  0x96   :  { %1816 = vmatpush1.bf16.msra.mxu1 %v4030_v50  ;;  %1774 = vmatprep.subr.bf16.mxu0 %v4035_v51  ;;  %v4116_v50 = vld [vmem:[#allocation5 + $0x24c] ss:$16 sps:$4 sm:$0xff]   ;;  %v4111_v51 = vld [vmem:[#allocation5 + $0x48] ss:$16 sps:$4 sm:$0xff]  }
  0x97   :  { %1817 = vmatprep.subr.bf16.mxu1 %v4038_v52  ;;  %v4114_v52 = vld [vmem:[#allocation5 + $0x248] ss:$16 sps:$4 sm:$0xff]  }
  0x99   :  { %1775 = vmatpush2.bf16.msra.mxu0 %v4033_v53  ;;  %v4119_v53 = vld [vmem:[#allocation5 + $0x2c] ss:$16 sps:$4 sm:$0xff]  }
  0x9a   :  { %1818 = vmatpush2.bf16.msra.mxu1 %v4036_v56  ;;  %1776 = vmatprep.subr.bf16.mxu0 %v4041_v57  ;;  %v4122_v56 = vld [vmem:[#allocation5 + $0x22c] ss:$16 sps:$4 sm:$0xff]   ;;  %v4117_v57 = vld [vmem:[#allocation5 + $0x28] ss:$16 sps:$4 sm:$0xff]  }
  0x9b   :  { %1819 = vmatprep.subr.bf16.mxu1 %v4044_v58  ;;  %v4120_v58 = vld [vmem:[#allocation5 + $0x228] ss:$16 sps:$4 sm:$0xff]  }
  0x9d   :  { %1777 = vmatpush2.bf16.msra.mxu0 %v4039_v59  ;;  %v4125_v59 = vld [vmem:[#allocation5 + $0xc] ss:$16 sps:$4 sm:$0xff]  }
  0x9e   :  { %1820 = vmatpush2.bf16.msra.mxu1 %v4042_v60  ;;  %1778 = vmatprep.subr.bf16.mxu0 %v4047_v61  ;;  %v4128_v60 = vld [vmem:[#allocation5 + $0x20c] ss:$16 sps:$4 sm:$0xff]   ;;  %v4123_v61 = vld [vmem:[#allocation5 + $0x8] ss:$16 sps:$4 sm:$0xff]  }
  0x9f   :  { %1821 = vmatprep.subr.bf16.mxu1 %v4050_v62  ;;  %v4126_v62 = vld [vmem:[#allocation5 + $0x208] ss:$16 sps:$4 sm:$0xff]  }
  0xa1   :  { %1779 = vmatpush2.bf16.msra.mxu0 %v4045_v63  ;;  %v4131_v63 = vld [vmem:[#allocation5 + $0x1ec] ss:$16 sps:$4 sm:$0xff]  }
  0xa2   :  { %1822 = vmatpush2.bf16.msra.mxu1 %v4048_v0  ;;  %1780 = vmatprep.subr.bf16.mxu0 %v4053_v1  ;;  %v4134_v0 = vld [vmem:[#allocation5 + $0x3ec] ss:$16 sps:$4 sm:$0xff]   ;;  %v4129_v1 = vld [vmem:[#allocation5 + $0x1e8] ss:$16 sps:$4 sm:$0xff]  }
  0xa3   :  { %1823 = vmatprep.subr.bf16.mxu1 %v4056_v2  ;;  %v4132_v2 = vld [vmem:[#allocation5 + $0x3e8] ss:$16 sps:$4 sm:$0xff]  }
  0xa5   :  { %1781 = vmatpush2.bf16.msra.mxu0 %v4051_v3  ;;  %v4137_v3 = vld [vmem:[#allocation5 + $0x1cc] ss:$16 sps:$4 sm:$0xff]  }
  0xa6   :  { %1824 = vmatpush2.bf16.msra.mxu1 %v4054_v4  ;;  %1782 = vmatprep.subr.bf16.mxu0 %v4059_v5  ;;  %v4140_v4 = vld [vmem:[#allocation5 + $0x3cc] ss:$16 sps:$4 sm:$0xff]   ;;  %v4135_v5 = vld [vmem:[#allocation5 + $0x1c8] ss:$16 sps:$4 sm:$0xff]  }
  0xa7   :  { %1825 = vmatprep.subr.bf16.mxu1 %v4062_v6  ;;  %v4138_v6 = vld [vmem:[#allocation5 + $0x3c8] ss:$16 sps:$4 sm:$0xff]  }
  0xa9   :  { %1783 = vmatpush2.bf16.msra.mxu0 %v4057_v7  ;;  %v4143_v7 = vld [vmem:[#allocation5 + $0x1ac] ss:$16 sps:$4 sm:$0xff]  }
  0xaa   :  { %1826 = vmatpush2.bf16.msra.mxu1 %v4060_v8  ;;  %1784 = vmatprep.subr.bf16.mxu0 %v4065_v9  ;;  %v4146_v8 = vld [vmem:[#allocation5 + $0x3ac] ss:$16 sps:$4 sm:$0xff]   ;;  %v4141_v9 = vld [vmem:[#allocation5 + $0x1a8] ss:$16 sps:$4 sm:$0xff]  }
  0xab   :  { %1827 = vmatprep.subr.bf16.mxu1 %v4068_v10  ;;  %v4144_v10 = vld [vmem:[#allocation5 + $0x3a8] ss:$16 sps:$4 sm:$0xff]  }
  0xad   :  { %1785 = vmatpush2.bf16.msra.mxu0 %v4063_v11  ;;  %v4149_v11 = vld [vmem:[#allocation5 + $0x18c] ss:$16 sps:$4 sm:$0xff]  }
  0xae   :  { %1828 = vmatpush2.bf16.msra.mxu1 %v4066_v12  ;;  %1786 = vmatprep.subr.bf16.mxu0 %v4071_v15  ;;  %v4152_v12 = vld [vmem:[#allocation5 + $0x38c] ss:$16 sps:$4 sm:$0xff]   ;;  %v4147_v15 = vld [vmem:[#allocation5 + $0x188] ss:$16 sps:$4 sm:$0xff]  }
  0xaf   :  { %1829 = vmatprep.subr.bf16.mxu1 %v4074_v16  ;;  %v4150_v16 = vld [vmem:[#allocation5 + $0x388] ss:$16 sps:$4 sm:$0xff]  }
  0xb1   :  { %1787 = vmatpush2.bf16.msra.mxu0 %v4069_v17  ;;  %v4155_v17 = vld [vmem:[#allocation5 + $0x16c] ss:$16 sps:$4 sm:$0xff]  }
  0xb2   :  { %1830 = vmatpush2.bf16.msra.mxu1 %v4072_v18  ;;  %1788 = vmatprep.subr.bf16.mxu0 %v4077_v19  ;;  %v4158_v18 = vld [vmem:[#allocation5 + $0x36c] ss:$16 sps:$4 sm:$0xff]   ;;  %v4153_v19 = vld [vmem:[#allocation5 + $0x168] ss:$16 sps:$4 sm:$0xff]  }
  0xb3   :  { %1831 = vmatprep.subr.bf16.mxu1 %v4080_v20  ;;  %v4156_v20 = vld [vmem:[#allocation5 + $0x368] ss:$16 sps:$4 sm:$0xff]  }
  0xb5   :  { %1789 = vmatpush2.bf16.msra.mxu0 %v4075_v21  ;;  %v4161_v21 = vld [vmem:[#allocation5 + $0x14c] ss:$16 sps:$4 sm:$0xff]  }
  0xb6   :  { %1832 = vmatpush2.bf16.msra.mxu1 %v4078_v22  ;;  %1844 = vmatprep.subr.bf16.mxu0 %v4083_v27  ;;  %v4164_v22 = vld [vmem:[#allocation5 + $0x34c] ss:$16 sps:$4 sm:$0xff]   ;;  %v4165_v27 = vld [vmem:[#allocation5 + $0x128] ss:$16 sps:$4 sm:$0xff]  }
  0xb7   :  { %1887 = vmatprep.subr.bf16.mxu1 %v4086_v28  ;;  %v4168_v28 = vld [vmem:[#allocation5 + $0x328] ss:$16 sps:$4 sm:$0xff]  }
  0xb8   :  { %1791 = vmatmul.mubr.bf16.vlgmr.msra.gmra.mxu0 %v4681_v29 }
  0xb9   :  { %1834 = vmatmul.mubr.bf16.vlgmr.msra.gmra.mxu1 %v4683_v30  ;;  %1845 = vmatpush1.bf16.msra.mxu0 %v4081_v31  ;;  %v4173_v31 = vld [vmem:[#allocation5 + $0x10c] ss:$16 sps:$4 sm:$0xff]  }
  0xba   :  { %1888 = vmatpush1.bf16.msra.mxu1 %v4084_v32  ;;  %1846 = vmatprep.subr.bf16.mxu0 %v4089_v33  ;;  %v4176_v32 = vld [vmem:[#allocation5 + $0x30c] ss:$16 sps:$4 sm:$0xff]   ;;  %v4171_v33 = vld [vmem:[#allocation5 + $0x108] ss:$16 sps:$4 sm:$0xff]  }
  0xbb   :  { %1889 = vmatprep.subr.bf16.mxu1 %v4092_v34  ;;  %1876 = vmatprep.mubr.bf16.mxu0 %v4663_v54  ;;  %v4108_v54 = vld [vmem:[#allocation5 + $0x268] ss:$16 sps:$4 sm:$0xff]  }
  0xbc   :  { %1919 = vmatprep.mubr.bf16.mxu1 %v4665_v55  ;;  %v4113_v55 = vld [vmem:[#allocation5 + $0x4c] ss:$16 sps:$4 sm:$0xff]   ;;  %v4174_v34 = vld [vmem:[#allocation5 + $0x308] ss:$16 sps:$4 sm:$0xff]  }
  0xbd   :  { %1847 = vmatpush1.bf16.msra.mxu0 %v4087_v35  ;;  %v4179_v35 = vld [vmem:[#allocation5 + $0x4ec] ss:$16 sps:$4 sm:$0xff]  }
  0xbe   :  { %1890 = vmatpush1.bf16.msra.mxu1 %v4090_v36  ;;  %1848 = vmatprep.subr.bf16.mxu0 %v4095_v37  ;;  %v4182_v36 = vld [vmem:[#allocation5 + $0x6ec] ss:$16 sps:$4 sm:$0xff]   ;;  %v4177_v37 = vld [vmem:[#allocation5 + $0x4e8] ss:$16 sps:$4 sm:$0xff]  }
  0xbf   :  { %1891 = vmatprep.subr.bf16.mxu1 %v4098_v38  ;;  %v4180_v38 = vld [vmem:[#allocation5 + $0x6e8] ss:$16 sps:$4 sm:$0xff]  }
  0xc1   :  { %1849 = vmatpush1.bf16.msra.mxu0 %v4093_v39  ;;  %v4185_v39 = vld [vmem:[#allocation5 + $0x4cc] ss:$16 sps:$4 sm:$0xff]  }
  0xc2   :  { %1892 = vmatpush1.bf16.msra.mxu1 %v4096_v40  ;;  %1850 = vmatprep.subr.bf16.mxu0 %v4101_v41  ;;  %v4188_v40 = vld [vmem:[#allocation5 + $0x6cc] ss:$16 sps:$4 sm:$0xff]   ;;  %v4183_v41 = vld [vmem:[#allocation5 + $0x4c8] ss:$16 sps:$4 sm:$0xff]  }
  0xc3   :  { %1893 = vmatprep.subr.bf16.mxu1 %v4104_v42  ;;  %v4186_v42 = vld [vmem:[#allocation5 + $0x6c8] ss:$16 sps:$4 sm:$0xff]  }
  0xc5   :  { %1851 = vmatpush1.bf16.msra.mxu0 %v4099_v43  ;;  %v4191_v43 = vld [vmem:[#allocation5 + $0x4ac] ss:$16 sps:$4 sm:$0xff]  }
  0xc6   :  { %1894 = vmatpush1.bf16.msra.mxu1 %v4102_v44  ;;  %1852 = vmatprep.subr.bf16.mxu0 %v4107_v45  ;;  %v4194_v44 = vld [vmem:[#allocation5 + $0x6ac] ss:$16 sps:$4 sm:$0xff]   ;;  %v4189_v45 = vld [vmem:[#allocation5 + $0x4a8] ss:$16 sps:$4 sm:$0xff]  }
  0xc7   :  { %1895 = vmatprep.subr.bf16.mxu1 %v4110_v47  ;;  %v4192_v47 = vld [vmem:[#allocation5 + $0x6a8] ss:$16 sps:$4 sm:$0xff]  }
  0xc9   :  { %1853 = vmatpush1.bf16.msra.mxu0 %v4105_v49  ;;  %v4197_v49 = vld [vmem:[#allocation5 + $0x48c] ss:$16 sps:$4 sm:$0xff]  }
  0xca   :  { %1896 = vmatpush1.bf16.msra.mxu1 %v4108_v54  ;;  %1854 = vmatprep.subr.bf16.mxu0 %v4113_v55  ;;  %v4200_v54 = vld [vmem:[#allocation5 + $0x68c] ss:$16 sps:$4 sm:$0xff]  }
  0xcb   :  { %1897 = vmatprep.subr.bf16.mxu1 %v4116_v50  ;;  %v4203_v55 = vld [vmem:[#allocation5 + $0x46c] ss:$16 sps:$4 sm:$0xff]  }
  0xcc   :  { %v4206_v50 = vld [vmem:[#allocation5 + $0x66c] ss:$16 sps:$4 sm:$0xff]  }
  0xcd   :  { %1855 = vmatpush1.bf16.msra.mxu0 %v4111_v51  ;;  %v4201_v51 = vld [vmem:[#allocation5 + $0x468] ss:$16 sps:$4 sm:$0xff]  }
  0xce   :  { %1898 = vmatpush1.bf16.msra.mxu1 %v4114_v52  ;;  %1856 = vmatprep.subr.bf16.mxu0 %v4119_v53  ;;  %v4204_v52 = vld [vmem:[#allocation5 + $0x668] ss:$16 sps:$4 sm:$0xff]   ;;  %v4209_v53 = vld [vmem:[#allocation5 + $0x44c] ss:$16 sps:$4 sm:$0xff]  }
  0xcf   :  { %1899 = vmatprep.subr.bf16.mxu1 %v4122_v56  ;;  %v4210_v56 = vld [vmem:[#allocation5 + $0x648] ss:$16 sps:$4 sm:$0xff]  }
  0xd1   :  { %1857 = vmatpush1.bf16.msra.mxu0 %v4117_v57  ;;  %v4215_v57 = vld [vmem:[#allocation5 + $0x42c] ss:$16 sps:$4 sm:$0xff]  }
  0xd2   :  { %1900 = vmatpush1.bf16.msra.mxu1 %v4120_v58  ;;  %1858 = vmatprep.subr.bf16.mxu0 %v4125_v59  ;;  %v4218_v58 = vld [vmem:[#allocation5 + $0x62c] ss:$16 sps:$4 sm:$0xff]   ;;  %v4213_v59 = vld [vmem:[#allocation5 + $0x428] ss:$16 sps:$4 sm:$0xff]  }
  0xd3   :  { %1901 = vmatprep.subr.bf16.mxu1 %v4128_v60  ;;  %v4216_v60 = vld [vmem:[#allocation5 + $0x628] ss:$16 sps:$4 sm:$0xff]  }
  0xd5   :  { %1859 = vmatpush1.bf16.msra.mxu0 %v4123_v61  ;;  %v4221_v61 = vld [vmem:[#allocation5 + $0x40c] ss:$16 sps:$4 sm:$0xff]  }
  0xd6   :  { %1902 = vmatpush1.bf16.msra.mxu1 %v4126_v62  ;;  %1860 = vmatprep.subr.bf16.mxu0 %v4131_v63  ;;  %v4224_v62 = vld [vmem:[#allocation5 + $0x60c] ss:$16 sps:$4 sm:$0xff]   ;;  %v4219_v63 = vld [vmem:[#allocation5 + $0x408] ss:$16 sps:$4 sm:$0xff]  }
  0xd7   :  { %1903 = vmatprep.subr.bf16.mxu1 %v4134_v0  ;;  %v4222_v0 = vld [vmem:[#allocation5 + $0x608] ss:$16 sps:$4 sm:$0xff]  }
  0xd9   :  { %1861 = vmatpush2.bf16.msra.mxu0 %v4129_v1  ;;  %v4227_v1 = vld [vmem:[#allocation5 + $0x5ec] ss:$16 sps:$4 sm:$0xff]  }
  0xda   :  { %1904 = vmatpush2.bf16.msra.mxu1 %v4132_v2  ;;  %1862 = vmatprep.subr.bf16.mxu0 %v4137_v3  ;;  %v4230_v2 = vld [vmem:[#allocation5 + $0x7ec] ss:$16 sps:$4 sm:$0xff]   ;;  %v4225_v3 = vld [vmem:[#allocation5 + $0x5e8] ss:$16 sps:$4 sm:$0xff]  }
  0xdb   :  { %1905 = vmatprep.subr.bf16.mxu1 %v4140_v4  ;;  %v4228_v4 = vld [vmem:[#allocation5 + $0x7e8] ss:$16 sps:$4 sm:$0xff]  }
  0xdd   :  { %1863 = vmatpush2.bf16.msra.mxu0 %v4135_v5  ;;  %v4233_v5 = vld [vmem:[#allocation5 + $0x5cc] ss:$16 sps:$4 sm:$0xff]  }
  0xde   :  { %1906 = vmatpush2.bf16.msra.mxu1 %v4138_v6  ;;  %1864 = vmatprep.subr.bf16.mxu0 %v4143_v7  ;;  %v4236_v6 = vld [vmem:[#allocation5 + $0x7cc] ss:$16 sps:$4 sm:$0xff]   ;;  %v4231_v7 = vld [vmem:[#allocation5 + $0x5c8] ss:$16 sps:$4 sm:$0xff]  }
  0xdf   :  { %1907 = vmatprep.subr.bf16.mxu1 %v4146_v8  ;;  %v4234_v8 = vld [vmem:[#allocation5 + $0x7c8] ss:$16 sps:$4 sm:$0xff]  }
  0xe1   :  { %1865 = vmatpush2.bf16.msra.mxu0 %v4141_v9  ;;  %v4239_v9 = vld [vmem:[#allocation5 + $0x5ac] ss:$16 sps:$4 sm:$0xff]  }
  0xe2   :  { %1908 = vmatpush2.bf16.msra.mxu1 %v4144_v10  ;;  %1866 = vmatprep.subr.bf16.mxu0 %v4149_v11  ;;  %v4242_v10 = vld [vmem:[#allocation5 + $0x7ac] ss:$16 sps:$4 sm:$0xff]   ;;  %v4237_v11 = vld [vmem:[#allocation5 + $0x5a8] ss:$16 sps:$4 sm:$0xff]  }
  0xe3   :  { %1909 = vmatprep.subr.bf16.mxu1 %v4152_v12  ;;  %v4240_v12 = vld [vmem:[#allocation5 + $0x7a8] ss:$16 sps:$4 sm:$0xff]  }
  0xe5   :  { %1867 = vmatpush2.bf16.msra.mxu0 %v4147_v15  ;;  %v4245_v15 = vld [vmem:[#allocation5 + $0x58c] ss:$16 sps:$4 sm:$0xff]  }
  0xe6   :  { %1910 = vmatpush2.bf16.msra.mxu1 %v4150_v16  ;;  %1868 = vmatprep.subr.bf16.mxu0 %v4155_v17  ;;  %v4248_v16 = vld [vmem:[#allocation5 + $0x78c] ss:$16 sps:$4 sm:$0xff]   ;;  %v4243_v17 = vld [vmem:[#allocation5 + $0x588] ss:$16 sps:$4 sm:$0xff]  }
  0xe7   :  { %1911 = vmatprep.subr.bf16.mxu1 %v4158_v18  ;;  %v4246_v18 = vld [vmem:[#allocation5 + $0x788] ss:$16 sps:$4 sm:$0xff]  }
  0xe9   :  { %1869 = vmatpush2.bf16.msra.mxu0 %v4153_v19  ;;  %v4251_v19 = vld [vmem:[#allocation5 + $0x56c] ss:$16 sps:$4 sm:$0xff]  }
  0xea   :  { %1912 = vmatpush2.bf16.msra.mxu1 %v4156_v20  ;;  %1870 = vmatprep.subr.bf16.mxu0 %v4161_v21  ;;  %v4254_v20 = vld [vmem:[#allocation5 + $0x76c] ss:$16 sps:$4 sm:$0xff]   ;;  %v4249_v21 = vld [vmem:[#allocation5 + $0x568] ss:$16 sps:$4 sm:$0xff]  }
  0xeb   :  { %1913 = vmatprep.subr.bf16.mxu1 %v4164_v22  ;;  %v4252_v22 = vld [vmem:[#allocation5 + $0x768] ss:$16 sps:$4 sm:$0xff]  }
  0xed   :  { %1871 = vmatpush2.bf16.msra.mxu0 %v4159_v23  ;;  %v4257_v23 = vld [vmem:[#allocation5 + $0x54c] ss:$16 sps:$4 sm:$0xff]  }
  0xee   :  { %1914 = vmatpush2.bf16.msra.mxu1 %v4162_v24  ;;  %1872 = vmatprep.subr.bf16.mxu0 %v4167_v25  ;;  %v4260_v24 = vld [vmem:[#allocation5 + $0x74c] ss:$16 sps:$4 sm:$0xff]   ;;  %v4255_v25 = vld [vmem:[#allocation5 + $0x548] ss:$16 sps:$4 sm:$0xff]  }
  0xef   :  { %1915 = vmatprep.subr.bf16.mxu1 %v4170_v26  ;;  %v4258_v26 = vld [vmem:[#allocation5 + $0x748] ss:$16 sps:$4 sm:$0xff]  }
  0xf1   :  { %1873 = vmatpush2.bf16.msra.mxu0 %v4165_v27  ;;  %v4263_v27 = vld [vmem:[#allocation5 + $0x52c] ss:$16 sps:$4 sm:$0xff]  }
  0xf2   :  { %1916 = vmatpush2.bf16.msra.mxu1 %v4168_v28  ;;  %1874 = vmatprep.subr.bf16.mxu0 %v4173_v31  ;;  %v4266_v28 = vld [vmem:[#allocation5 + $0x72c] ss:$16 sps:$4 sm:$0xff]   ;;  %v4261_v31 = vld [vmem:[#allocation5 + $0x528] ss:$16 sps:$4 sm:$0xff]  }
  0xf3   :  { %1917 = vmatprep.subr.bf16.mxu1 %v4176_v32  ;;  %v4264_v32 = vld [vmem:[#allocation5 + $0x728] ss:$16 sps:$4 sm:$0xff]  }
  0xf5   :  { %1875 = vmatpush2.bf16.msra.mxu0 %v4171_v33  ;;  %v4269_v33 = vld [vmem:[#allocation5 + $0x50c] ss:$16 sps:$4 sm:$0xff]  }
  0xf6   :  { %1918 = vmatpush2.bf16.msra.mxu1 %v4174_v34  ;;  %1930 = vmatprep.subr.bf16.mxu0 %v4179_v35  ;;  %v4272_v34 = vld [vmem:[#allocation5 + $0x70c] ss:$16 sps:$4 sm:$0xff]   ;;  %v4267_v35 = vld [vmem:[#allocation5 + $0x508] ss:$16 sps:$4 sm:$0xff]  }
  0xf7   :  { %1973 = vmatprep.subr.bf16.mxu1 %v4182_v36  ;;  %v4270_v36 = vld [vmem:[#allocation5 + $0x708] ss:$16 sps:$4 sm:$0xff]  }
  0xf8   :  { %1877 = vmatmul.mubr.bf16.vlgmr.msra.gmra.mxu0 %v4669_v13  ;;  %v4195_v13 = vld [vmem:[#allocation5 + $0x488] ss:$16 sps:$4 sm:$0xff]  }
  0xf9   :  { %1920 = vmatmul.mubr.bf16.vlgmr.msra.gmra.mxu1 %v4671_v14  ;;  %1931 = vmatpush1.bf16.msra.mxu0 %v4177_v37  ;;  %v4198_v14 = vld [vmem:[#allocation5 + $0x688] ss:$16 sps:$4 sm:$0xff]   ;;  %v4275_v37 = vld [vmem:[#allocation7 + $0xe4] ss:$16 sps:$4 sm:$0xff]  }
  0xfa   :  { %1974 = vmatpush1.bf16.msra.mxu1 %v4180_v38  ;;  %1932 = vmatprep.subr.bf16.mxu0 %v4185_v39  ;;  %v4273_v38 = vld [vmem:[#allocation7 + $0xe0] ss:$16 sps:$4 sm:$0xff]   ;;  %v4278_v39 = vld [vmem:[#allocation7 + $0xc4] ss:$16 sps:$4 sm:$0xff]  }
  0xfb   :  { %1975 = vmatprep.subr.bf16.mxu1 %v4188_v40  ;;  %1962 = vmatprep.mubr.bf16.mxu0 %v4675_v46  ;;  %v4212_v46 = vld [vmem:[#allocation5 + $0x64c] ss:$16 sps:$4 sm:$0xff]   ;;  %v4276_v40 = vld [vmem:[#allocation7 + $0xc0] ss:$16 sps:$4 sm:$0xff]  }
  0xfc   :  { %2005 = vmatprep.mubr.bf16.mxu1 %v4677_v48  ;;  %v4207_v48 = vld [vmem:[#allocation5 + $0x448] ss:$16 sps:$4 sm:$0xff]  }
  0xfd   :  { %1933 = vmatpush1.bf16.msra.mxu0 %v4183_v41  ;;  %v4281_v41 = vld [vmem:[#allocation7 + $0xa4] ss:$16 sps:$4 sm:$0xff]  }
  0xfe   :  { %1976 = vmatpush1.bf16.msra.mxu1 %v4186_v42  ;;  %1934 = vmatprep.subr.bf16.mxu0 %v4191_v43  ;;  %v4279_v42 = vld [vmem:[#allocation7 + $0xa0] ss:$16 sps:$4 sm:$0xff]   ;;  %v4284_v43 = vld [vmem:[#allocation7 + $0x84] ss:$16 sps:$4 sm:$0xff]  }
  0xff   :  { %1977 = vmatprep.subr.bf16.mxu1 %v4194_v44  ;;  %v4282_v44 = vld [vmem:[#allocation7 + $0x80] ss:$16 sps:$4 sm:$0xff]  }
 0x101   :  { %1935 = vmatpush1.bf16.msra.mxu0 %v4189_v45  ;;  %v4287_v45 = vld [vmem:[#allocation7 + $0x64] ss:$16 sps:$4 sm:$0xff]  }
 0x102   :  { %1978 = vmatpush1.bf16.msra.mxu1 %v4192_v47  ;;  %1936 = vmatprep.subr.bf16.mxu0 %v4197_v49  ;;  %v4285_v47 = vld [vmem:[#allocation7 + $0x60] ss:$16 sps:$4 sm:$0xff]   ;;  %v4290_v49 = vld [vmem:[#allocation7 + $0x44] ss:$16 sps:$4 sm:$0xff]  }
 0x103   :  { %1979 = vmatprep.subr.bf16.mxu1 %v4200_v54  ;;  %v4369_v54 = vld [vmem:[#allocation7 + $0x2e0] ss:$16 sps:$4 sm:$0xff]  }
 0x105   :  { %1937 = vmatpush1.bf16.msra.mxu0 %v4195_v13  ;;  %v4293_v13 = vld [vmem:[#allocation7 + $0x24] ss:$16 sps:$4 sm:$0xff]  }
 0x106   :  { %1980 = vmatpush1.bf16.msra.mxu1 %v4198_v14  ;;  %1938 = vmatprep.subr.bf16.mxu0 %v4203_v55  ;;  %v4372_v14 = vld [vmem:[#allocation7 + $0x2c0] ss:$16 sps:$4 sm:$0xff]   ;;  %v4374_v55 = vld [vmem:[#allocation7 + $0x2c4] ss:$16 sps:$4 sm:$0xff]  }
 0x107   :  { %1981 = vmatprep.subr.bf16.mxu1 %v4206_v50  ;;  %v4377_v50 = vld [vmem:[#allocation7 + $0x2a4] ss:$16 sps:$4 sm:$0xff]  }
 0x109   :  { %1939 = vmatpush1.bf16.msra.mxu0 %v4201_v51  ;;  %v4291_v51 = vld [vmem:[#allocation7 + $0x20] ss:$16 sps:$4 sm:$0xff]  }
 0x10a   :  { %1982 = vmatpush1.bf16.msra.mxu1 %v4204_v52  ;;  %1940 = vmatprep.subr.bf16.mxu0 %v4209_v53  ;;  %v4296_v52 = vld [vmem:[#allocation7 + $0x4] ss:$16 sps:$4 sm:$0xff]   ;;  %v4375_v53 = vld [vmem:[#allocation7 + $0x2a0] ss:$16 sps:$4 sm:$0xff]  }
 0x10b   :  { %1983 = vmatprep.subr.bf16.mxu1 %v4212_v46  ;;  %v4380_v46 = vld [vmem:[#allocation7 + $0x284] ss:$16 sps:$4 sm:$0xff]  }
 0x10d   :  { %1941 = vmatpush1.bf16.msra.mxu0 %v4207_v48  ;;  %v4294_v48 = vld [vmem:[#allocation7] ss:$16 sps:$4 sm:$0xff]  }
 0x10e   :  { %1984 = vmatpush1.bf16.msra.mxu1 %v4210_v56  ;;  %1942 = vmatprep.subr.bf16.mxu0 %v4215_v57  ;;  %v4299_v56 = vld [vmem:[#allocation7 + $0x1e4] ss:$16 sps:$4 sm:$0xff]   ;;  %v4378_v57 = vld [vmem:[#allocation7 + $0x280] ss:$16 sps:$4 sm:$0xff]  }
 0x10f   :  { %1985 = vmatprep.subr.bf16.mxu1 %v4218_v58  ;;  %v4383_v58 = vld [vmem:[#allocation7 + $0x264] ss:$16 sps:$4 sm:$0xff]  }
 0x111   :  { %1943 = vmatpush1.bf16.msra.mxu0 %v4213_v59  ;;  %v4297_v59 = vld [vmem:[#allocation7 + $0x1e0] ss:$16 sps:$4 sm:$0xff]  }
 0x112   :  { %1986 = vmatpush1.bf16.msra.mxu1 %v4216_v60  ;;  %1944 = vmatprep.subr.bf16.mxu0 %v4221_v61  ;;  %v4302_v60 = vld [vmem:[#allocation7 + $0x1c4] ss:$16 sps:$4 sm:$0xff]   ;;  %v4381_v61 = vld [vmem:[#allocation7 + $0x260] ss:$16 sps:$4 sm:$0xff]  }
 0x113   :  { %1987 = vmatprep.subr.bf16.mxu1 %v4224_v62  ;;  %v4386_v62 = vld [vmem:[#allocation7 + $0x244] ss:$16 sps:$4 sm:$0xff]  }
 0x115   :  { %1945 = vmatpush1.bf16.msra.mxu0 %v4219_v63  ;;  %v4300_v63 = vld [vmem:[#allocation7 + $0x1c0] ss:$16 sps:$4 sm:$0xff]  }
 0x116   :  { %1988 = vmatpush1.bf16.msra.mxu1 %v4222_v0  ;;  %1946 = vmatprep.subr.bf16.mxu0 %v4227_v1  ;;  %v4305_v0 = vld [vmem:[#allocation7 + $0x1a4] ss:$16 sps:$4 sm:$0xff]   ;;  %v4384_v1 = vld [vmem:[#allocation7 + $0x240] ss:$16 sps:$4 sm:$0xff]  }
 0x117   :  { %1989 = vmatprep.subr.bf16.mxu1 %v4230_v2  ;;  %v4389_v2 = vld [vmem:[#allocation7 + $0x224] ss:$16 sps:$4 sm:$0xff]  }
 0x119   :  { %1947 = vmatpush2.bf16.msra.mxu0 %v4225_v3  ;;  %v4303_v3 = vld [vmem:[#allocation7 + $0x1a0] ss:$16 sps:$4 sm:$0xff]  }
 0x11a   :  { %1990 = vmatpush2.bf16.msra.mxu1 %v4228_v4  ;;  %1948 = vmatprep.subr.bf16.mxu0 %v4233_v5  ;;  %v4308_v4 = vld [vmem:[#allocation7 + $0x184] ss:$16 sps:$4 sm:$0xff]   ;;  %v4387_v5 = vld [vmem:[#allocation7 + $0x220] ss:$16 sps:$4 sm:$0xff]  }
 0x11b   :  { %1991 = vmatprep.subr.bf16.mxu1 %v4236_v6  ;;  %v4392_v6 = vld [vmem:[#allocation7 + $0x204] ss:$16 sps:$4 sm:$0xff]  }
 0x11d   :  { %1949 = vmatpush2.bf16.msra.mxu0 %v4231_v7  ;;  %v4306_v7 = vld [vmem:[#allocation7 + $0x180] ss:$16 sps:$4 sm:$0xff]  }
 0x11e   :  { %1992 = vmatpush2.bf16.msra.mxu1 %v4234_v8  ;;  %1950 = vmatprep.subr.bf16.mxu0 %v4239_v9  ;;  %v4311_v8 = vld [vmem:[#allocation7 + $0x164] ss:$16 sps:$4 sm:$0xff]   ;;  %v4390_v9 = vld [vmem:[#allocation7 + $0x200] ss:$16 sps:$4 sm:$0xff]  }
 0x11f   :  { %1993 = vmatprep.subr.bf16.mxu1 %v4242_v10  ;;  %v4395_v10 = vld [vmem:[#allocation7 + $0x3e4] ss:$16 sps:$4 sm:$0xff]  }
 0x121   :  { %1951 = vmatpush2.bf16.msra.mxu0 %v4237_v11  ;;  %v372_v11 = vlaneseq }
 0x122   :  { %1994 = vmatpush2.bf16.msra.mxu1 %v4240_v12  ;;  %1952 = vmatprep.subr.bf16.mxu0 %v4245_v15  ;;  %v4309_v12 = vld [vmem:[#allocation7 + $0x160] ss:$16 sps:$4 sm:$0xff]   ;;  %v4314_v15 = vld [vmem:[#allocation7 + $0x144] ss:$16 sps:$4 sm:$0xff]  }
 0x123   :  { %1995 = vmatprep.subr.bf16.mxu1 %v4248_v16  ;;  %v4393_v16 = vld [vmem:[#allocation7 + $0x3e0] ss:$16 sps:$4 sm:$0xff]  }
 0x125   :  { %1953 = vmatpush2.bf16.msra.mxu0 %v4243_v17  ;;  %v4398_v17 = vld [vmem:[#allocation7 + $0x3c4] ss:$16 sps:$4 sm:$0xff]  }
 0x126   :  { %1996 = vmatpush2.bf16.msra.mxu1 %v4246_v18  ;;  %1954 = vmatprep.subr.bf16.mxu0 %v4251_v19  ;;  %v4695_v18 = vshrl.u32 %v372_v11, 7  ;;  %v4312_v19 = vld [vmem:[#allocation7 + $0x140] ss:$16 sps:$4 sm:$0xff]  }
 0x127   :  { %1997 = vmatprep.subr.bf16.mxu1 %v4254_v20  ;;  %v4414_v11 = vld [vmem:[#allocation7 + $0x300] ss:$16 sps:$4 sm:$0xff]  }
 0x129   :  { %1955 = vmatpush2.bf16.msra.mxu0 %v4249_v21 }
 0x12a   :  { %1998 = vmatpush2.bf16.msra.mxu1 %v4252_v22  ;;  %1956 = vmatprep.subr.bf16.mxu0 %v4257_v23  ;;  %v4317_v22 = vld [vmem:[#allocation7 + $0x124] ss:$16 sps:$4 sm:$0xff]   ;;  %v4396_v23 = vld [vmem:[#allocation7 + $0x3c0] ss:$16 sps:$4 sm:$0xff]  }
 0x12b   :  { %1999 = vmatprep.subr.bf16.mxu1 %v4260_v24  ;;  %v4401_v24 = vld [vmem:[#allocation7 + $0x3a4] ss:$16 sps:$4 sm:$0xff]  }
 0x12d   :  { %1957 = vmatpush2.bf16.msra.mxu0 %v4255_v25  ;;  %v374_v25 = vsub.s32 0, %v4695_v18 }
 0x12e   :  { %2000 = vmatpush2.bf16.msra.mxu1 %v4258_v26  ;;  %1958 = vmatprep.subr.bf16.mxu0 %v4263_v27  ;;  %v378_v26 = vsub.s32 1, %v4695_v18  ;;  %v4315_v27 = vld [vmem:[#allocation7 + $0x120] ss:$16 sps:$4 sm:$0xff]  }
 0x12f   :  { %2001 = vmatprep.subr.bf16.mxu1 %v4266_v28  ;;  %v4702_v28 = vld [vmem:[%s4751_s2] sm:$0xf] }
 0x131   :  { %1959 = vmatpush2.bf16.msra.mxu0 %v4261_v31 }
 0x132   :  { %2002 = vmatpush2.bf16.msra.mxu1 %v4264_v32  ;;  %1960 = vmatprep.subr.bf16.mxu0 %v4269_v33  ;;  %v4320_v33 = vld [vmem:[#allocation7 + $0x104] ss:$16 sps:$4 sm:$0xff]  }
 0x133   :  { %2003 = vmatprep.subr.bf16.mxu1 %v4272_v34  ;;  %v4399_v34 = vld [vmem:[#allocation7 + $0x3a0] ss:$16 sps:$4 sm:$0xff]  }
 0x135   :  { %1961 = vmatpush2.bf16.msra.mxu0 %v4267_v35  ;;  %v4404_v35 = vld [vmem:[#allocation7 + $0x384] ss:$16 sps:$4 sm:$0xff]  }
 0x136   :  { %2004 = vmatpush2.bf16.msra.mxu1 %v4270_v36  ;;  %2834 = vmatprep.subr.bf16.mxu0 %v4275_v37  ;;  %v375_v36 = vrot.slane %v4702_v28, %v374_v25  ;;  %v379_v37 = vrot.slane %v4702_v28, %v378_v26 }
 0x138   :  { %1963 = vmatmul.mubr.bf16.vlgmr.msra.gmra.mxu0 %v4681_v29  ;;  %v4371_v29 = vld [vmem:[#allocation7 + $0x2e4] ss:$16 sps:$4 sm:$0xff]   ;;  %v1706_v20 = vpop.f32.mrf.mxu0 }
 0x139   :  { %2006 = vmatmul.mubr.bf16.vlgmr.msra.gmra.mxu1 %v4683_v30  ;;  %2835 = vmatpush1.bf16.msra.mxu0 %v4273_v38  ;;  %v4288_v30 = vld [vmem:[#allocation7 + $0x40] ss:$16 sps:$4 sm:$0xff]   ;;  %v1749_v21 = vpop.f32.mrf.mxu1 }
 0x13a   :  { %2836 = vmatprep.subr.bf16.mxu0 %v4278_v39  ;;  %2877 = vmatprep.subr.bf16.mxu1 %v4371_v29  ;;  %v1708_v31 = vpop.f32.mrf.mxu0  ;;  %v4318_v38 = vld [vmem:[#allocation7 + $0x100] ss:$16 sps:$4 sm:$0xff]  }
 0x13b   :  { %2878 = vmatpush1.bf16.msra.mxu1 %v4369_v54  ;;  %v1751_v32 = vpop.f32.mrf.mxu1 }
 0x13c   :  { %2879 = vmatprep.subr.bf16.mxu1 %v4374_v55  ;;  %v1710_v39 = vpop.f32.mrf.mxu0  ;;  %v4405_v55 = vld [vmem:[#allocation7 + $0x360] ss:$16 sps:$4 sm:$0xff]  }
 0x13d   :  { %2837 = vmatpush1.bf16.msra.mxu0 %v4276_v40  ;;  %v1753_v40 = vpop.f32.mrf.mxu1 }
 0x13e   :  { %2838 = vmatprep.subr.bf16.mxu0 %v4281_v41  ;;  %v4323_v41 = vld [vmem:[#allocation7 + $0xec] ss:$16 sps:$4 sm:$0xff]  }
 0x13f   :  { %2880 = vmatpush1.bf16.msra.mxu1 %v4372_v14 }
 0x140   :  { %2881 = vmatprep.subr.bf16.mxu1 %v4377_v50 }
 0x141   :  { %2839 = vmatpush1.bf16.msra.mxu0 %v4279_v42  ;;  %v4402_v42 = vld [vmem:[#allocation7 + $0x380] ss:$16 sps:$4 sm:$0xff]  }
 0x142   :  { %2840 = vmatprep.subr.bf16.mxu0 %v4284_v43  ;;  %v1707_v43 = vadd.f32 %v1706_v20, %v375_v36 }
 0x143   :  { %2882 = vmatpush1.bf16.msra.mxu1 %v4375_v53 }
 0x144   :  { %2883 = vmatprep.subr.bf16.mxu1 %v4380_v46 }
 0x145   :  { %2841 = vmatpush1.bf16.msra.mxu0 %v4282_v44  ;;  %v1709_v44 = vadd.f32 %v1708_v31, %v379_v37  ;;  %v4329_v31 = vld [vmem:[#allocation7 + $0xac] ss:$16 sps:$4 sm:$0xff]  }
 0x146   :  { %2842 = vmatprep.subr.bf16.mxu0 %v4287_v45  ;;  %v1712_v45 = vpop.f32.mrf.mxu0 }
 0x147   :  { %2884 = vmatpush1.bf16.msra.mxu1 %v4378_v57  ;;  %v1752_v14 = vadd.f32 %v1751_v32, %v1709_v44  ;;  %v1713_v50 = vadd.f32 %v1712_v45, %v379_v37  ;;  %v4410_v57 = vld [vmem:[#allocation7 + $0x344] ss:$16 sps:$4 sm:$0xff]   ;;  %v4327_v32 = vld [vmem:[#allocation7 + $0xa8] ss:$16 sps:$4 sm:$0xff]   ;;  %v4338_v37 = vld [vmem:[#allocation7 + $0x4c] ss:$16 sps:$4 sm:$0xff]  }
 0x148   :  { %2885 = vmatprep.subr.bf16.mxu1 %v4383_v58  ;;  %v4345_v44 = vld [vmem:[#allocation7 + $0x1e8] ss:$16 sps:$4 sm:$0xff]   ;;  %v4350_v45 = vld [vmem:[#allocation7 + $0x1cc] ss:$16 sps:$4 sm:$0xff]  }
 0x149   :  { %2843 = vmatpush1.bf16.msra.mxu0 %v4285_v47  ;;  %v1755_v47 = vpop.f32.mrf.mxu1 }
 0x14a   :  { %2844 = vmatprep.subr.bf16.mxu0 %v4290_v49  ;;  %v1711_v49 = vadd.f32 %v1710_v39, %v375_v36  ;;  %v4333_v36 = vld [vmem:[#allocation7 + $0x68] ss:$16 sps:$4 sm:$0xff]   ;;  %v4341_v39 = vld [vmem:[#allocation7 + $0x2c] ss:$16 sps:$4 sm:$0xff]  }
 0x14b   :  { %2886 = vmatpush1.bf16.msra.mxu1 %v4381_v61  ;;  %v1756_v61 = vadd.f32 %v1755_v47, %v1713_v50  ;;  %v4348_v47 = vld [vmem:[#allocation7 + $0x1c8] ss:$16 sps:$4 sm:$0xff]  }
 0x14c   :  { %2887 = vmatprep.subr.bf16.mxu1 %v4386_v62  ;;  %v1754_v53 = vadd.f32 %v1753_v40, %v1711_v49  ;;  %v4339_v40 = vld [vmem:[#allocation7 + $0x28] ss:$16 sps:$4 sm:$0xff]   ;;  %v4353_v49 = vld [vmem:[#allocation7 + $0x1ac] ss:$16 sps:$4 sm:$0xff]  }
 0x14d   :  { %2845 = vmatpush1.bf16.msra.mxu0 %v4288_v30  ;;  %v4407_v30 = vld [vmem:[#allocation7 + $0x364] ss:$16 sps:$4 sm:$0xff]   ;;  %v4360_v50 = vld [vmem:[#allocation7 + $0x148] ss:$16 sps:$4 sm:$0xff]  }
 0x14e   :  { %2846 = vmatprep.subr.bf16.mxu0 %v4293_v13  ;;  %v1750_v13 = vadd.f32 %v1749_v21, %v1707_v43  ;;  %v4321_v21 = vld [vmem:[#allocation7 + $0xe8] ss:$16 sps:$4 sm:$0xff]   ;;  %v4347_v43 = vld [vmem:[#allocation7 + $0x1ec] ss:$16 sps:$4 sm:$0xff]  }
 0x14f   :  { %2888 = vmatpush1.bf16.msra.mxu1 %v4384_v1 }
 0x150   :  { %2889 = vmatprep.subr.bf16.mxu1 %v4389_v2 }
 0x151   :  { %2847 = vmatpush1.bf16.msra.mxu0 %v4291_v51 }
 0x152   :  { %2848 = vmatprep.subr.bf16.mxu0 %v4296_v52 }
 0x153   :  { %2890 = vmatpush1.bf16.msra.mxu1 %v4387_v5 }
 0x154   :  { %2891 = vmatprep.subr.bf16.mxu1 %v4392_v6  ;;  %v4411_v6 = vld [vmem:[#allocation7 + $0x320] ss:$16 sps:$4 sm:$0xff]  }
 0x155   :  { %2849 = vmatpush1.bf16.msra.mxu0 %v4294_v48 }
 0x156   :  { %2850 = vmatprep.subr.bf16.mxu0 %v4299_v56 }
 0x157   :  { %2892 = vmatpush1.bf16.msra.mxu1 %v4390_v9 }
 0x158   :  { %2893 = vmatprep.subr.bf16.mxu1 %v4395_v10 }
 0x159   :  { %2851 = vmatpush2.bf16.msra.mxu0 %v4297_v59 }
 0x15a   :  { %2852 = vmatprep.subr.bf16.mxu0 %v4302_v60  ;;  %v4408_v60 = vld [vmem:[#allocation7 + $0x340] ss:$16 sps:$4 sm:$0xff]  }
 0x15b   :  { %2894 = vmatpush2.bf16.msra.mxu1 %v4393_v16 }
 0x15c   :  { %2895 = vmatprep.subr.bf16.mxu1 %v4398_v17 }
 0x15d   :  { %2853 = vmatpush2.bf16.msra.mxu0 %v4300_v63 }
 0x15e   :  { %2854 = vmatprep.subr.bf16.mxu0 %v4305_v0 }
 0x15f   :  { %2896 = vmatpush2.bf16.msra.mxu1 %v4396_v23  ;;  %v4326_v23 = vld [vmem:[#allocation7 + $0xcc] ss:$16 sps:$4 sm:$0xff]  }
 0x160   :  { %2897 = vmatprep.subr.bf16.mxu1 %v4401_v24  ;;  %v4419_v24 = vld [vmem:[#allocation7 + $0x2ec] ss:$16 sps:$4 sm:$0xff]  }
 0x161   :  { %2855 = vmatpush2.bf16.msra.mxu0 %v4303_v3  ;;  %v4413_v3 = vld [vmem:[#allocation7 + $0x324] ss:$16 sps:$4 sm:$0xff]  }
 0x162   :  { %2856 = vmatprep.subr.bf16.mxu0 %v4308_v4 }
 0x163   :  { %2898 = vmatpush2.bf16.msra.mxu1 %v4399_v34  ;;  %v4330_v34 = vld [vmem:[#allocation7 + $0x88] ss:$16 sps:$4 sm:$0xff]  }
 0x164   :  { %2899 = vmatprep.subr.bf16.mxu1 %v4404_v35  ;;  %v4335_v35 = vld [vmem:[#allocation7 + $0x6c] ss:$16 sps:$4 sm:$0xff]  }
 0x165   :  { %2857 = vmatpush2.bf16.msra.mxu0 %v4306_v7 }
 0x166   :  { %2858 = vmatprep.subr.bf16.mxu0 %v4311_v8 }
 0x167   :  { %2900 = vmatpush2.bf16.msra.mxu1 %v4402_v42  ;;  %v4342_v42 = vld [vmem:[#allocation7 + $0x8] ss:$16 sps:$4 sm:$0xff]  }
 0x168   :  { %2901 = vmatprep.subr.bf16.mxu1 %v4407_v30  ;;  %v4354_v30 = vld [vmem:[#allocation7 + $0x188] ss:$16 sps:$4 sm:$0xff]  }
 0x169   :  { %2859 = vmatpush2.bf16.msra.mxu0 %v4309_v12 }
 0x16a   :  { %2860 = vmatprep.subr.bf16.mxu0 %v4314_v15  ;;  %v4416_v15 = vld [vmem:[#allocation7 + $0x304] ss:$16 sps:$4 sm:$0xff]  }
 0x16b   :  { %2902 = vmatpush2.bf16.msra.mxu1 %v4405_v55  ;;  %v4362_v55 = vld [vmem:[#allocation7 + $0x14c] ss:$16 sps:$4 sm:$0xff]  }
 0x16c   :  { %2903 = vmatprep.subr.bf16.mxu1 %v4410_v57  ;;  %v382_v57 = vsub.s32 2, %v4695_v18 }
 0x16d   :  { %2861 = vmatpush2.bf16.msra.mxu0 %v4312_v19 }
 0x16e   :  { %2862 = vmatprep.subr.bf16.mxu0 %v4317_v22 }
 0x16f   :  { %2904 = vmatpush2.bf16.msra.mxu1 %v4408_v60 }
 0x170   :  { %2905 = vmatprep.subr.bf16.mxu1 %v4413_v3 }
 0x171   :  { %2863 = vmatpush2.bf16.msra.mxu0 %v4315_v27  ;;  %v4324_v27 = vld [vmem:[#allocation7 + $0xc8] ss:$16 sps:$4 sm:$0xff]  }
 0x172   :  { %2864 = vmatprep.subr.bf16.mxu0 %v4320_v33  ;;  %v4332_v33 = vld [vmem:[#allocation7 + $0x8c] ss:$16 sps:$4 sm:$0xff]  }
 0x173   :  { %2906 = vmatpush2.bf16.msra.mxu1 %v4411_v6 }
 0x174   :  { %2907 = vmatprep.subr.bf16.mxu1 %v4416_v15 }
 0x175   :  { %2865 = vmatpush2.bf16.msra.mxu0 %v4318_v38  ;;  %v4336_v38 = vld [vmem:[#allocation7 + $0x48] ss:$16 sps:$4 sm:$0xff]  }
 0x176   :  { %2920 = vmatprep.subr.bf16.mxu0 %v4323_v41  ;;  %v4344_v41 = vld [vmem:[#allocation7 + $0xc] ss:$16 sps:$4 sm:$0xff]  }
 0x177   :  { %2908 = vmatpush2.bf16.msra.mxu1 %v4414_v11 }
 0x178   :  { %v1792_v54 = vpop.f32.mrf.mxu0  ;;  %2963 = vmatprep.subr.bf16.mxu1 %v4419_v24 }
 0x179   :  { %v1835_v29 = vpop.f32.mrf.mxu1  ;;  %v1793_v46 = vadd.f32 %v1792_v54, %v1750_v13  ;;  %v4351_v54 = vld [vmem:[#allocation7 + $0x1a8] ss:$16 sps:$4 sm:$0xff]   ;;  %v4359_v13 = vld [vmem:[#allocation7 + $0x16c] ss:$16 sps:$4 sm:$0xff]  }
 0x17a   :  { %v1794_v51 = vpop.f32.mrf.mxu0 }
 0x17b   :  { %v1837_v52 = vpop.f32.mrf.mxu1  ;;  %v1795_v48 = vadd.f32 %v1794_v51, %v1752_v14  ;;  %v1836_v0 = vadd.f32 %v1835_v29, %v1793_v46  ;;  %v4356_v29 = vld [vmem:[#allocation7 + $0x18c] ss:$16 sps:$4 sm:$0xff]   ;;  %v4357_v14 = vld [vmem:[#allocation7 + $0x168] ss:$16 sps:$4 sm:$0xff]  }
 0x17c   :  { %v1796_v56 = vpop.f32.mrf.mxu0  ;;  %v4365_v51 = vld [vmem:[#allocation7 + $0x12c] ss:$16 sps:$4 sm:$0xff]   ;;  %v4366_v46 = vld [vmem:[#allocation7 + $0x108] ss:$16 sps:$4 sm:$0xff]  }
 0x17d   :  { %v1797_v58 = vadd.f32 %v1796_v56, %v1754_v53  ;;  %v1839_v59 = vpop.f32.mrf.mxu1  ;;  %v1838_v62 = vadd.f32 %v1837_v52, %v1795_v48  ;;  %v2024_v9 = vmul.f32 0.2, %v1836_v0  ;;  %vm2016_vm2 = vcmp.gt.f32.partialorder %v1836_v0, 0.0  ;;  %v4363_v52 = vld [vmem:[#allocation7 + $0x128] ss:$16 sps:$4 sm:$0xff]  }
 0x17e   :  { %v1798_v63 = vpop.f32.mrf.mxu0  ;;  %v4368_v53 = vld [vmem:[#allocation7 + $0x10c] ss:$16 sps:$4 sm:$0xff]  }
 0x17f   :  { %v1840_v1 = vadd.f32 %v1839_v59, %v1797_v58  ;;  %v1799_v2 = vadd.f32 %v1798_v63, %v1756_v61  ;;  %v1841_v5 = vpop.f32.mrf.mxu1  ;;  %v2025_v7 = vmul.f32 0.2, %v1838_v62  ;;  %vm2017_vm1 = vcmp.gt.f32.partialorder %v1838_v62, 0.0 }
 0x180   :  { %v2032_v19 = vsel %vm2016_vm2, %v1836_v0, %v2024_v9  ;;  %v386_v58 = vsub.s32 3, %v4695_v18  ;;  %v383_v61 = vrot.slane %v4702_v28, %v382_v57  ;;  %vm3407_vm2 = vcmask 7168  }
 0x181   :  { %v2028_v4 = vmul.f32 0.2, %v1840_v1  ;;  %vm2020_vm0 = vcmp.gt.f32.partialorder %v1840_v1, 0.0  ;;  %v1842_v8 = vadd.f32 %v1841_v5, %v1799_v2  ;;  %v2033_v16 = vsel %vm2017_vm1, %v1838_v62, %v2025_v7 }
 0x182   :  { %v387_v62 = vrot.slane %v4702_v28, %v386_v58 }
 0x183   :  { %vm2021_vm3 = vcmp.gt.f32.partialorder %v1842_v8, 0.0  ;;  %v2029_v10 = vmul.f32 0.2, %v1842_v8  ;;  %v2036_v12 = vsel %vm2020_vm0, %v1840_v1, %v2028_v4 }
 0x184   :  { %v4710_v22 = vpack.c.bf16 %v2036_v12, %v2032_v19 }
 0x185   :  { %v2037_v17 = vsel %vm2021_vm3, %v1842_v8, %v2029_v10 }
 0x186   :  { %v2041_v20 = vpack.c.bf16 %v2037_v17, %v2033_v16 }
 0x188   :  { %2866 = vmatprep.mubr.bf16.mxu0 %v2041_v20 }
 0x189   :  { %2867 = vmatmul.mubr.bf16.vlgmr.msra.gmra.mxu0 %v4710_v22 }
 0x18a   :  { %2921 = vmatpush1.bf16.msra.mxu0 %v4321_v21  ;;  %2952 = vmatprep.mubr.bf16.mxu0 %v2041_v20 }
 0x18b   :  { %2922 = vmatprep.subr.bf16.mxu0 %v4326_v23 }
 0x18e   :  { %2923 = vmatpush1.bf16.msra.mxu0 %v4324_v27 }
 0x18f   :  { %2924 = vmatprep.subr.bf16.mxu0 %v4329_v31 }
 0x192   :  { %2925 = vmatpush1.bf16.msra.mxu0 %v4327_v32 }
 0x193   :  { %2926 = vmatprep.subr.bf16.mxu0 %v4332_v33 }
 0x196   :  { %2927 = vmatpush1.bf16.msra.mxu0 %v4330_v34 }
 0x197   :  { %2928 = vmatprep.subr.bf16.mxu0 %v4335_v35 }
 0x19a   :  { %2929 = vmatpush1.bf16.msra.mxu0 %v4333_v36 }
 0x19b   :  { %2930 = vmatprep.subr.bf16.mxu0 %v4338_v37 }
 0x19e   :  { %2931 = vmatpush1.bf16.msra.mxu0 %v4336_v38 }
 0x19f   :  { %2932 = vmatprep.subr.bf16.mxu0 %v4341_v39 }
 0x1a2   :  { %2933 = vmatpush1.bf16.msra.mxu0 %v4339_v40 }
 0x1a3   :  { %2934 = vmatprep.subr.bf16.mxu0 %v4344_v41 }
 0x1a6   :  { %2935 = vmatpush1.bf16.msra.mxu0 %v4342_v42 }
 0x1a7   :  { %2936 = vmatprep.subr.bf16.mxu0 %v4347_v43  ;;  %v4417_v43 = vld [vmem:[#allocation7 + $0x2e8] ss:$16 sps:$4 sm:$0xff]  }
 0x1aa   :  { %2937 = vmatpush2.bf16.msra.mxu0 %v4345_v44 }
 0x1ab   :  { %2938 = vmatprep.subr.bf16.mxu0 %v4350_v45  ;;  %v4422_v45 = vld [vmem:[#allocation7 + $0x2cc] ss:$16 sps:$4 sm:$0xff]  }
 0x1ae   :  { %2939 = vmatpush2.bf16.msra.mxu0 %v4348_v47  ;;  %v4420_v47 = vld [vmem:[#allocation7 + $0x2c8] ss:$16 sps:$4 sm:$0xff]  }
 0x1af   :  { %2940 = vmatprep.subr.bf16.mxu0 %v4353_v49  ;;  %v4425_v49 = vld [vmem:[#allocation7 + $0x2ac] ss:$16 sps:$4 sm:$0xff]  }
 0x1b2   :  { %2941 = vmatpush2.bf16.msra.mxu0 %v4351_v54  ;;  %v4423_v54 = vld [vmem:[#allocation7 + $0x2a8] ss:$16 sps:$4 sm:$0xff]  }
 0x1b3   :  { %2942 = vmatprep.subr.bf16.mxu0 %v4356_v29  ;;  %v4428_v29 = vld [vmem:[#allocation7 + $0x28c] ss:$16 sps:$4 sm:$0xff]  }
 0x1b6   :  { %2943 = vmatpush2.bf16.msra.mxu0 %v4354_v30  ;;  %v4465_v30 = vld [vmem:[#allocation8 + $0x78] sm:$0xff]  }
 0x1b7   :  { %2944 = vmatprep.subr.bf16.mxu0 %v4359_v13  ;;  %v4466_v13 = vld [vmem:[#allocation8 + $0x38] sm:$0xff]  }
 0x1b8   :  { %v1878_v48 = vpop.f32.mrf.mxu0 }
 0x1b9   :  { %v1921_v56 = vpop.f32.mrf.mxu1  ;;  %v1879_v1 = vadd.f32 %v1878_v48, %v383_v61  ;;  %v4470_v48 = vld [vmem:[#allocation8 + $0x28] sm:$0xff]  }
 0x1ba   :  { %2945 = vmatpush2.bf16.msra.mxu0 %v4357_v14  ;;  %v1880_v59 = vpop.f32.mrf.mxu0  ;;  %v4467_v14 = vld [vmem:[#allocation8 + $0x70] sm:$0xff]  }
 0x1bb   :  { %2946 = vmatprep.subr.bf16.mxu0 %v4362_v55  ;;  %v1923_v60 = vpop.f32.mrf.mxu1  ;;  %v1881_v2 = vadd.f32 %v1880_v59, %v387_v62  ;;  %v1922_v8 = vadd.f32 %v1921_v56, %v1879_v1  ;;  %v4426_v55 = vld [vmem:[#allocation7 + $0x288] ss:$16 sps:$4 sm:$0xff]   ;;  %v4471_v56 = vld [vmem:[#allocation8 + $0x60] sm:$0xff]  }
 0x1bc   :  { %v1882_v63 = vpop.f32.mrf.mxu0  ;;  %v4432_v59 = vld [vmem:[#allocation7 + $0x248] ss:$16 sps:$4 sm:$0xff]  }
 0x1bd   :  { %v1925_v0 = vpop.f32.mrf.mxu1  ;;  %v1883_v5 = vadd.f32 %v1882_v63, %v383_v61  ;;  %v1924_v9 = vadd.f32 %v1923_v60, %v1881_v2  ;;  %v4437_v60 = vld [vmem:[#allocation7 + $0x22c] ss:$16 sps:$4 sm:$0xff]   ;;  %v4472_v61 = vld [vmem:[#allocation8 + $0x20] sm:$0xff]   ;;  %v4435_v63 = vld [vmem:[#allocation7 + $0x228] ss:$16 sps:$4 sm:$0xff]  }
 0x1be   :  { %2947 = vmatpush2.bf16.msra.mxu0 %v4360_v50  ;;  %v1884_v3 = vpop.f32.mrf.mxu0  ;;  %v4431_v50 = vld [vmem:[#allocation7 + $0x26c] ss:$16 sps:$4 sm:$0xff]   ;;  %v4438_v1 = vld [vmem:[#allocation7 + $0x208] ss:$16 sps:$4 sm:$0xff]  }
 0x1bf   :  { %2948 = vmatprep.subr.bf16.mxu0 %v4365_v51  ;;  %v1927_v4 = vpop.f32.mrf.mxu1  ;;  %v1885_v10 = vadd.f32 %v1884_v3, %v387_v62  ;;  %v1926_v15 = vadd.f32 %v1925_v0, %v1883_v5  ;;  %v4468_v51 = vld [vmem:[#allocation8 + $0x30] sm:$0xff]   ;;  %v4473_v62 = vld [vmem:[#allocation8 + $0x58] sm:$0xff]  }
 0x1c0   :  { %v4440_v0 = vld [vmem:[#allocation7 + $0x20c] ss:$16 sps:$4 sm:$0xff]   ;;  %v4441_v3 = vld [vmem:[#allocation7 + $0x3e8] ss:$16 sps:$4 sm:$0xff]  }
 0x1c1   :  { %v1928_v21 = vadd.f32 %v1927_v4, %v1885_v10  ;;  %v4443_v2 = vld [vmem:[#allocation7 + $0x3ec] ss:$16 sps:$4 sm:$0xff]   ;;  %v4444_v5 = vld [vmem:[#allocation7 + $0x3c8] ss:$16 sps:$4 sm:$0xff]  }
 0x1c2   :  { %2949 = vmatpush2.bf16.msra.mxu0 %v4363_v52  ;;  %v4469_v52 = vld [vmem:[#allocation8 + $0x68] sm:$0xff]  }
 0x1c3   :  { %2950 = vmatprep.subr.bf16.mxu0 %v4368_v53  ;;  %v4429_v53 = vld [vmem:[#allocation7 + $0x268] ss:$16 sps:$4 sm:$0xff]   ;;  %v4446_v4 = vld [vmem:[#allocation7 + $0x3cc] ss:$16 sps:$4 sm:$0xff]  }
 0x1c4   :  { %v4455_v10 = vld [vmem:[#allocation7 + $0x36c] ss:$16 sps:$4 sm:$0xff]  }
 0x1c6   :  { %2951 = vmatpush2.bf16.msra.mxu0 %v4366_v46  ;;  %v4434_v46 = vld [vmem:[#allocation7 + $0x24c] ss:$16 sps:$4 sm:$0xff]  }
 0x1c7   :  { %3836 = vmatprep.subr.bf16.mxu0 %v4465_v30  ;;  %v2172_v30 = vld [vmem:[%s4753_s4] sm:$0xf] }
 0x1c9   :  { %2953 = vmatmul.mubr.bf16.vlgmr.msra.gmra.mxu0 %v4710_v22 }
 0x1ca   :  { %3837 = vmatpush3.bf16.msra.mxu0 %v4466_v13  ;;  %v2181_v13 = vrot.slane %v2172_v30, %v378_v26 }
 0x1cb   :  { %3838 = vmatprep.subr.bf16.mxu0 %v4467_v14  ;;  %v2177_v14 = vrot.slane %v2172_v30, %v374_v25 }
 0x1ce   :  { %3839 = vmatpush3.bf16.msra.mxu0 %v4468_v51 }
 0x1cf   :  { %3840 = vmatprep.subr.bf16.mxu0 %v4469_v52 }
 0x1d2   :  { %3841 = vmatpush3.bf16.msra.mxu0 %v4470_v48 }
 0x1d3   :  { %3842 = vmatprep.subr.bf16.mxu0 %v4471_v56 }
 0x1d6   :  { %3843 = vmatpush3.bf16.msra.mxu0 %v4472_v61 }
 0x1d7   :  { %3844 = vmatprep.subr.bf16.mxu0 %v4473_v62 }
 0x1f8   :  { %v1964_v6 = vpop.f32.mrf.mxu0 }
 0x1f9   :  { %v2007_v7 = vpop.f32.mrf.mxu1  ;;  %v1965_v16 = vadd.f32 %v1964_v6, %v1922_v8  ;;  %v4449_v6 = vld [vmem:[#allocation7 + $0x3ac] ss:$16 sps:$4 sm:$0xff]  }
 0x1fa   :  { %v1966_v11 = vpop.f32.mrf.mxu0  ;;  %v4452_v8 = vld [vmem:[#allocation7 + $0x38c] ss:$16 sps:$4 sm:$0xff]  }
 0x1fb   :  { %v2009_v12 = vpop.f32.mrf.mxu1  ;;  %v1967_v17 = vadd.f32 %v1966_v11, %v1924_v9  ;;  %v2008_v24 = vadd.f32 %v2007_v7, %v1965_v16  ;;  %v4447_v7 = vld [vmem:[#allocation7 + $0x3a8] ss:$16 sps:$4 sm:$0xff]   ;;  %v4461_v16 = vld [vmem:[#allocation7 + $0x32c] ss:$16 sps:$4 sm:$0xff]  }
 0x1fc   :  { %v1968_v19 = vpop.f32.mrf.mxu0  ;;  %v4450_v9 = vld [vmem:[#allocation7 + $0x388] ss:$16 sps:$4 sm:$0xff]  }
 0x1fd   :  { %v1969_v20 = vadd.f32 %v1968_v19, %v1926_v15  ;;  %v2011_v28 = vpop.f32.mrf.mxu1  ;;  %v2010_v22 = vadd.f32 %v2009_v12, %v1967_v17  ;;  %v2026_v36 = vmul.f32 0.2, %v2008_v24  ;;  %vm2018_vm6 = vcmp.gt.f32.partialorder %v2008_v24, 0.0  ;;  %v4453_v11 = vld [vmem:[#allocation7 + $0x368] ss:$16 sps:$4 sm:$0xff]  }
 0x1fe   :  { %v1970_v23 = vpop.f32.mrf.mxu0  ;;  %v4458_v12 = vld [vmem:[#allocation7 + $0x34c] ss:$16 sps:$4 sm:$0xff]   ;;  %v4456_v15 = vld [vmem:[#allocation7 + $0x348] ss:$16 sps:$4 sm:$0xff]  }
 0x1ff   :  { %v2012_v27 = vadd.f32 %v2011_v28, %v1969_v20  ;;  %v1971_v31 = vadd.f32 %v1970_v23, %v1928_v21  ;;  %v2013_v33 = vpop.f32.mrf.mxu1  ;;  %v2027_v34 = vmul.f32 0.2, %v2010_v22  ;;  %vm2019_vm5 = vcmp.gt.f32.partialorder %v2010_v22, 0.0  ;;  %v4459_v17 = vld [vmem:[#allocation7 + $0x328] ss:$16 sps:$4 sm:$0xff]   ;;  %v4475_v21 = vld [vmem:[#allocation8 + $0x50] sm:$0xff]  }
 0x200   :  { %v2034_v41 = vsel %vm2018_vm6, %v2008_v24, %v2026_v36  ;;  %v4464_v19 = vld [vmem:[#allocation7 + $0x30c] ss:$16 sps:$4 sm:$0xff]   ;;  %v4462_v20 = vld [vmem:[#allocation7 + $0x308] ss:$16 sps:$4 sm:$0xff]  }
 0x201   :  { %v2030_v32 = vmul.f32 0.2, %v2012_v27  ;;  %vm2022_vm4 = vcmp.gt.f32.partialorder %v2012_v27, 0.0  ;;  %v2014_v35 = vadd.f32 %v2013_v33, %v1971_v31  ;;  %v2035_v39 = vsel %vm2019_vm5, %v2010_v22, %v2027_v34  ;;  %v4474_v28 = vld [vmem:[#allocation8 + $0x18] sm:$0xff]   ;;  %v4476_v22 = vld [vmem:[#allocation8 + $0x10] sm:$0xff]   ;;  %v4477_v23 = vld [vmem:[#allocation8 + $0x48] sm:$0xff]  }
 0x202   :  { %3845 = vmatpush3.bf16.msra.mxu0 %v4474_v28  ;;  %v4478_v24 = vld [vmem:[#allocation8 + $0x8] sm:$0xff]   ;;  %v4480_v31 = vld [vmem:[#allocation8] sm:$0xff]   ;;  %v4482_v33 = vld [vmem:[#allocation8 + $0xb8] sm:$0xff]  }
 0x203   :  { %vm2023_vm7 = vcmp.gt.f32.partialorder %v2014_v35, 0.0  ;;  %v2031_v37 = vmul.f32 0.2, %v2014_v35  ;;  %v2038_v38 = vsel %vm2022_vm4, %v2012_v27, %v2030_v32  ;;  %3846 = vmatprep.subr.bf16.mxu0 %v4475_v21  ;;  %v4479_v27 = vld [vmem:[#allocation8 + $0x40] sm:$0xff]   ;;  %v4481_v32 = vld [vmem:[#allocation8 + $0xf8] sm:$0xff]   ;;  %v4483_v34 = vld [vmem:[#allocation8 + $0xf0] sm:$0xff]  }
 0x204   :  { %v4722_v44 = vpack.c.bf16 %v2038_v38, %v2034_v41  ;;  %v4485_v36 = vld [vmem:[#allocation8 + $0xe8] sm:$0xff]   ;;  %v4487_v38 = vld [vmem:[#allocation8 + $0xe0] sm:$0xff]   ;;  %v4490_v41 = vld [vmem:[#allocation8 + $0x98] sm:$0xff]  }
 0x205   :  { %v2039_v40 = vsel %vm2023_vm7, %v2014_v35, %v2031_v37  ;;  %v4484_v35 = vld [vmem:[#allocation8 + $0xb0] sm:$0xff]   ;;  %v4486_v37 = vld [vmem:[#allocation8 + $0xa8] sm:$0xff]  }
 0x206   :  { %v2043_v42 = vpack.c.bf16 %v2039_v40, %v2035_v39  ;;  %3847 = vmatpush3.bf16.msra.mxu0 %v4476_v22  ;;  %v4488_v39 = vld [vmem:[#allocation8 + $0xa0] sm:$0xff]   ;;  %v4489_v40 = vld [vmem:[#allocation8 + $0xd8] sm:$0xff]  }
 0x207   :  { %3848 = vmatprep.subr.bf16.mxu0 %v4477_v23 }
 0x208   :  { %2909 = vmatprep.mubr.bf16.mxu1 %v2043_v42 }
 0x209   :  { %2910 = vmatmul.mubr.bf16.vlgmr.msra.gmra.mxu1 %v4722_v44 }
 0x20a   :  { %2964 = vmatpush1.bf16.msra.mxu1 %v4417_v43  ;;  %2995 = vmatprep.mubr.bf16.mxu1 %v2043_v42  ;;  %v4491_v42 = vld [vmem:[#allocation8 + $0xd0] sm:$0xff]  }
 0x20b   :  { %2965 = vmatprep.subr.bf16.mxu1 %v4422_v45  ;;  %3849 = vmatpush3.bf16.msra.mxu0 %v4478_v24  ;;  %v4492_v43 = vld [vmem:[#allocation8 + $0x90] sm:$0xff]   ;;  %v4494_v45 = vld [vmem:[#allocation8 + $0x88] sm:$0xff]  }
 0x20c   :  { %3850 = vmatprep.subr.bf16.mxu0 %v4479_v27 }
 0x20e   :  { %2966 = vmatpush1.bf16.msra.mxu1 %v4420_v47  ;;  %v4495_v47 = vld [vmem:[#allocation8 + $0xc0] sm:$0xff]  }
 0x20f   :  { %2967 = vmatprep.subr.bf16.mxu1 %v4425_v49  ;;  %3851 = vmatpush3.bf16.msra.mxu0 %v4480_v31  ;;  %v4496_v49 = vld [vmem:[#allocation8 + $0x80] sm:$0xff]  }
 0x212   :  { %2968 = vmatpush1.bf16.msra.mxu1 %v4423_v54 }
 0x213   :  { %2969 = vmatprep.subr.bf16.mxu1 %v4428_v29 }
 0x216   :  { %2970 = vmatpush1.bf16.msra.mxu1 %v4426_v55 }
 0x217   :  { %2971 = vmatprep.subr.bf16.mxu1 %v4431_v50 }
 0x21a   :  { %2972 = vmatpush1.bf16.msra.mxu1 %v4429_v53 }
 0x21b   :  { %2973 = vmatprep.subr.bf16.mxu1 %v4434_v46 }
 0x21e   :  { %2974 = vmatpush1.bf16.msra.mxu1 %v4432_v59 }
 0x21f   :  { %2975 = vmatprep.subr.bf16.mxu1 %v4437_v60 }
 0x222   :  { %2976 = vmatpush1.bf16.msra.mxu1 %v4435_v63 }
 0x223   :  { %2977 = vmatprep.subr.bf16.mxu1 %v4440_v0 }
 0x226   :  { %2978 = vmatpush1.bf16.msra.mxu1 %v4438_v1 }
 0x227   :  { %2979 = vmatprep.subr.bf16.mxu1 %v4443_v2 }
 0x22a   :  { %2980 = vmatpush2.bf16.msra.mxu1 %v4441_v3 }
 0x22b   :  { %2981 = vmatprep.subr.bf16.mxu1 %v4446_v4 }
 0x22e   :  { %2982 = vmatpush2.bf16.msra.mxu1 %v4444_v5 }
 0x22f   :  { %2983 = vmatprep.subr.bf16.mxu1 %v4449_v6 }
 0x232   :  { %2984 = vmatpush2.bf16.msra.mxu1 %v4447_v7 }
 0x233   :  { %2985 = vmatprep.subr.bf16.mxu1 %v4452_v8 }
 0x236   :  { %2986 = vmatpush2.bf16.msra.mxu1 %v4450_v9 }
 0x237   :  { %2987 = vmatprep.subr.bf16.mxu1 %v4455_v10 }
 0x23a   :  { %2988 = vmatpush2.bf16.msra.mxu1 %v4453_v11  ;;  %v2189_v11 = vrot.slane %v2172_v30, %v386_v58 }
 0x23b   :  { %2989 = vmatprep.subr.bf16.mxu1 %v4458_v12  ;;  %v2185_v12 = vrot.slane %v2172_v30, %v382_v57 }
 0x23e   :  { %2990 = vmatpush2.bf16.msra.mxu1 %v4456_v15 }
 0x23f   :  { %2991 = vmatprep.subr.bf16.mxu1 %v4461_v16 }
 0x242   :  { %2992 = vmatpush2.bf16.msra.mxu1 %v4459_v17 }
 0x243   :  { %2993 = vmatprep.subr.bf16.mxu1 %v4464_v19 }
 0x246   :  { %2994 = vmatpush2.bf16.msra.mxu1 %v4462_v20 }
 0x247   :  { %3858 = vmatprep.subr.bf16.mxu1 %v4481_v32 }
 0x249   :  { %2996 = vmatmul.mubr.bf16.vlgmr.msra.gmra.mxu1 %v4722_v44  ;;  %v4493_v44 = vld [vmem:[#allocation8 + $0xc8] sm:$0xff]   ;;  %v2868_v54 = vpop.f32.mrf.mxu0 }
 0x24a   :  { %3859 = vmatpush3.bf16.msra.mxu1 %v4482_v33  ;;  %v2869_v52 = vadd.f32 %v2868_v54, %v2177_v14 }
 0x24b   :  { %3860 = vmatprep.subr.bf16.mxu1 %v4483_v34  ;;  %v2870_v29 = vpop.f32.mrf.mxu0 }
 0x24c   :  { %v2871_v51 = vadd.f32 %v2870_v29, %v2181_v13 }
 0x24d   :  { %v2872_v55 = vpop.f32.mrf.mxu0 }
 0x24e   :  { %3861 = vmatpush3.bf16.msra.mxu1 %v4484_v35  ;;  %v2873_v48 = vadd.f32 %v2872_v55, %v2177_v14 }
 0x24f   :  { %3862 = vmatprep.subr.bf16.mxu1 %v4485_v36  ;;  %v2874_v53 = vpop.f32.mrf.mxu0 }
 0x250   :  { %v2875_v61 = vadd.f32 %v2874_v53, %v2181_v13 }
 0x252   :  { %3863 = vmatpush3.bf16.msra.mxu1 %v4486_v37 }
 0x253   :  { %3864 = vmatprep.subr.bf16.mxu1 %v4487_v38 }
 0x256   :  { %3865 = vmatpush3.bf16.msra.mxu1 %v4488_v39 }
 0x257   :  { %3866 = vmatprep.subr.bf16.mxu1 %v4489_v40 }
 0x25a   :  { %3867 = vmatpush3.bf16.msra.mxu1 %v4490_v41 }
 0x25b   :  { %3868 = vmatprep.subr.bf16.mxu1 %v4491_v42 }
 0x25e   :  { %3869 = vmatpush3.bf16.msra.mxu1 %v4492_v43 }
 0x25f   :  { %3870 = vmatprep.subr.bf16.mxu1 %v4493_v44 }
 0x262   :  { %3871 = vmatpush3.bf16.msra.mxu1 %v4494_v45  ;;  %v3801_v45 = vld [vmem:[%s4755_s6] ss:$0 sm:$0xff] }
 0x263   :  { %3872 = vmatprep.subr.bf16.mxu1 %v4495_v47 }
 0x266   :  { %3873 = vmatpush3.bf16.msra.mxu1 %v4496_v49 }
 0x289   :  { %v2954_v9 = vpop.f32.mrf.mxu0 }
 0x28a   :  { %v2955_v19 = vadd.f32 %v2954_v9, %v2185_v12 }
 0x28b   :  { %v2956_v10 = vpop.f32.mrf.mxu0 }
 0x28c   :  { %v2957_v17 = vadd.f32 %v2956_v10, %v2189_v11 }
 0x28d   :  { %v2958_v15 = vpop.f32.mrf.mxu0 }
 0x28e   :  { %v2959_v21 = vadd.f32 %v2958_v15, %v2185_v12 }
 0x28f   :  { %v2960_v20 = vpop.f32.mrf.mxu0 }
 0x290   :  { %v2961_v27 = vadd.f32 %v2960_v20, %v2189_v11 }
 0x2c9   :  { %v2911_v50 = vpop.f32.mrf.mxu1 }
 0x2ca   :  { %v2912_v59 = vadd.f32 %v2911_v50, %v2869_v52 }
 0x2cb   :  { %v2913_v46 = vpop.f32.mrf.mxu1 }
 0x2cc   :  { %v2914_v56 = vadd.f32 %v2913_v46, %v2871_v51  ;;  %v3014_v2 = vmul.f32 0.2, %v2912_v59  ;;  %vm3006_vm10 = vcmp.gt.f32.partialorder %v2912_v59, 0.0  ;;  %v3834_v46 = vld [vmem:[%s4756_s7] ss:$0 sm:$0xff] }
 0x2cd   :  { %v2915_v60 = vpop.f32.mrf.mxu1 }
 0x2ce   :  { %v2916_v62 = vadd.f32 %v2915_v60, %v2873_v48  ;;  %v3015_v0 = vmul.f32 0.2, %v2914_v56  ;;  %vm3007_vm9 = vcmp.gt.f32.partialorder %v2914_v56, 0.0  ;;  %v3022_v6 = vsel %vm3006_vm10, %v2912_v59, %v3014_v2 }
 0x2cf   :  { %v2917_v63 = vpop.f32.mrf.mxu1 }
 0x2d0   :  { %vm3010_vm8 = vcmp.gt.f32.partialorder %v2916_v62, 0.0  ;;  %v3018_v1 = vmul.f32 0.2, %v2916_v62  ;;  %v2918_v26 = vadd.f32 %v2917_v63, %v2875_v61  ;;  %v3023_v4 = vsel %vm3007_vm9, %v2914_v56, %v3015_v0  ;;  %v3835_v63 = vld [vmem:[#allocation2] ss:$0 sm:$0xff] }
 0x2d2   :  { %vm3011_vm11 = vcmp.gt.f32.partialorder %v2918_v26, 0.0  ;;  %v3019_v25 = vmul.f32 0.2, %v2918_v26  ;;  %v3026_v3 = vsel %vm3010_vm8, %v2916_v62, %v3018_v1 }
 0x2d3   :  { %v3030_v8 = vpack.c.bf16 %v3026_v3, %v3022_v6 }
 0x2d4   :  { %v3027_v5 = vsel %vm3011_vm11, %v2918_v26, %v3019_v25 }
 0x2d5   :  { %v3031_v7 = vpack.c.bf16 %v3027_v5, %v3023_v4 }
 0x2d7   :  { %3329 = vmatprep.mubr.bf16.mxu0 %v3031_v7 }
 0x2d8   :  { %3330 = vmatmul.mubr.bf16.vlgmr.msra.gmra.mxu0 %v3030_v8 }
 0x309   :  { %v2997_v16 = vpop.f32.mrf.mxu1 }
 0x30a   :  { %v2998_v23 = vadd.f32 %v2997_v16, %v2955_v19 }
 0x30b   :  { %v2999_v28 = vpop.f32.mrf.mxu1 }
 0x30c   :  { %v3000_v22 = vadd.f32 %v2999_v28, %v2957_v17  ;;  %v3016_v35 = vmul.f32 0.2, %v2998_v23  ;;  %vm3008_vm14 = vcmp.gt.f32.partialorder %v2998_v23, 0.0 }
 0x30d   :  { %v3001_v24 = vpop.f32.mrf.mxu1 }
 0x30e   :  { %v3002_v31 = vadd.f32 %v3001_v24, %v2959_v21  ;;  %v3017_v33 = vmul.f32 0.2, %v3000_v22  ;;  %vm3009_vm13 = vcmp.gt.f32.partialorder %v3000_v22, 0.0  ;;  %v3024_v38 = vsel %vm3008_vm14, %v2998_v23, %v3016_v35 }
 0x30f   :  { %v3003_v32 = vpop.f32.mrf.mxu1 }
 0x310   :  { %vm3012_vm12 = vcmp.gt.f32.partialorder %v3002_v31, 0.0  ;;  %v3020_v34 = vmul.f32 0.2, %v3002_v31  ;;  %v3004_v58 = vadd.f32 %v3003_v32, %v2961_v27  ;;  %v3025_v36 = vsel %vm3009_vm13, %v3000_v22, %v3017_v33 }
 0x312   :  { %vm3013_vm15 = vcmp.gt.f32.partialorder %v3004_v58, 0.0  ;;  %v3021_v18 = vmul.f32 0.2, %v3004_v58  ;;  %v3028_v57 = vsel %vm3012_vm12, %v3002_v31, %v3020_v34 }
 0x313   :  { %v3032_v40 = vpack.c.bf16 %v3028_v57, %v3024_v38 }
 0x314   :  { %v3029_v37 = vsel %vm3013_vm15, %v3004_v58, %v3021_v18 }
 0x315   :  { %v3033_v39 = vpack.c.bf16 %v3029_v37, %v3025_v36 }
 0x317   :  { %3370 = vmatprep.mubr.bf16.mxu1 %v3033_v39 }
 0x318   :  { %3371 = vmatmul.mubr.bf16.vlgmr.msra.gmra.mxu1 %v3032_v40 }
 0x398   :  { %v3852_v41 = vpop.f32.mrf.mxu0 }
 0x39a   :  { %v3853_v42 = vpop.f32.mrf.mxu0 }
 0x39b   :  { %v3854_v44 = vadd.f32 %v3853_v42, %v3852_v41 }
 0x39c   :  { %v3855_v43 = vpop.f32.mrf.mxu0 }
 0x39d   :  { %v3332_v29 = vadd.f32 %v3854_v44, %v3801_v45 }
 0x39e   :  { %v3856_v47 = vpop.f32.mrf.mxu0 }
 0x39f   :  { %v3857_v30 = vadd.f32 %v3856_v47, %v3855_v43 }
 0x3a1   :  { %v3335_v51 = vadd.f32 %v3857_v30, %v3801_v45 }
 0x3d8   :  { %v3874_v49 = vpop.f32.mrf.mxu1 }
 0x3da   :  { %v3875_v54 = vpop.f32.mrf.mxu1 }
 0x3db   :  { %v3876_v13 = vadd.f32 %v3875_v54, %v3874_v49 }
 0x3dc   :  { %v3877_v14 = vpop.f32.mrf.mxu1 }
 0x3dd   :  { %v3373_v55 = vadd.f32 %v3876_v13, %v3332_v29 }
 0x3de   :  { %v3878_v50 = vpop.f32.mrf.mxu1 }
 0x3df   :  { %v3879_v52 = vadd.f32 %v3878_v50, %v3877_v14  ;;  %vm3379_vm0 = vcmp.gt.f32.partialorder %v3373_v55, 0.0  ;;  %v3381_v53 = vmul.f32 0.2, %v3373_v55 }
 0x3e1   :  { %v3376_v48 = vadd.f32 %v3879_v52, %v3335_v51  ;;  %v3383_v56 = vsel %vm3379_vm0, %v3373_v55, %v3381_v53 }
 0x3e2   :  { %v3392_v59 = vmul.f32 %v3834_v46, %v3383_v56 }
 0x3e3   :  { %vm3380_vm1 = vcmp.gt.f32.partialorder %v3376_v48, 0.0  ;;  %v3382_v60 = vmul.f32 0.2, %v3376_v48 }
 0x3e4   :  { %3394 = vadd.xlane.f32.xlu0 %v3392_v59 }
 0x3e5   :  { %v3384_v61 = vsel %vm3380_vm1, %v3376_v48, %v3382_v60 }
 0x3e6   :  { %v3393_v62 = vmul.f32 %v3834_v46, %v3384_v61 }
 0x3e8   :  { %3396 = vadd.xlane.f32.xlu0 %v3393_v62 }
 0x46d   :  { %v3395_v0 = vpop.xlane.xlu0 %3394 }
 0x46e   :  { %v3405_v1 = vadd.f32 %v3835_v63, %v3395_v0 }
 0x470   :  { %3408 = vst.msk [vmem:[%s4758_s9] sm:$0xff] %vm3407_vm2, %v3405_v1 }
 0x471   :  { %v3397_v26 = vpop.xlane.xlu0 %3396 }
 0x472   :  { %v3406_v2 = vadd.f32 %v3835_v63, %v3397_v26 }
 0x474   :  { %3409 = vst.msk [vmem:[%s4758_s9 + $0x8] sm:$0xff] %vm3407_vm2, %v3406_v2 }
 0x475   :  { %3414 = vsyncpa [#allocation4], 1 }
 0x476   :  { %3415 = vsyncpa [#allocation6], 1 }
 0x477   :  { %3416 = vsyncpa [#allocation9], 1 }

</bundles_post_ra>
